<compile_context>
chip_gen: v5e
topology: v5e:2x2
jax: 0.10.0
libtpu: 0.0.40
codegen_flags: <defaults>
</compile_context>

<pallas_src>
import functools

import jax
import jax.numpy as jnp
from jax.experimental import pallas as pl
from jax.experimental.pallas import tpu as pltpu


def _round_up(v, m):
    return ((v + m - 1) // m) * m


def _vmem_capacity_bytes():
    try:
        return int(pltpu.get_tpu_info().vmem_capacity_bytes)
    except Exception:
        # Conservative fallback = v7x per-TensorCore VMEM.
        return 64 * 1024 * 1024


def _choose_row_tile(Ho, Wp, Wo, Cin, Cout_total, KKC, in_isz, out_isz, halo):
    """Conv-output rows per grid step (always a multiple of `halo`)."""
    vmem_cap = _vmem_capacity_bytes()
    # Double-buffered streaming budget: generous on 128 MiB parts (v5e/v6e),
    # tighter on v7x (64 MiB per TensorCore).
    budget = min(vmem_cap // 4, 24 * 1024 * 1024)
    bytes_per_row = (
        2 * Cin * Wp * in_isz            # main activation block (double buffered)
        + Cin * Wp * in_isz              # halo block + in-kernel assembly copy
        + 2 * KKC * Wo * in_isz          # patch build + flatten copy
        + Cout_total * Wo * 4            # f32 matmul accumulator (+ bias add)
        + 2 * Cout_total * Wo * out_isz  # output block (double buffered)
    )
    th = max(halo, budget // max(bytes_per_row, 1))
    th = (th // halo) * halo
    th = min(th, 512)                        # keep several grid steps on big images
    th = min(th, _round_up(Ho, halo))        # never exceed the (padded) image
    if Ho > halo:                            # >= 2 row tiles for v7x megacore balance
        th = min(th, _round_up(pl.cdiv(Ho, 2), halo))
    return max(th, halo)


def _conv_rows_kernel(xm_ref, xh_ref, w_ref, b_ref, o_ref, xscr_ref, *, K, Wo):
    # xm_ref  : (1, Cin, Th,   Wp)  main padded-activation rows of this tile
    # xh_ref  : (1, Cin, HALO, Wp)  rows just below (only the first K-1 matter)
    # w_ref   : (Cout, K*K*Cin)     resident reshaped conv weight
    # b_ref   : (Cout, 1)           resident bias (f32)
    # o_ref   : (1, Cout, Th, Wo)   conv-output rows of this tile (NCHW order)
    # xscr_ref: (Cin, Th+HALO, Wp)  VMEM scratch: main + halo rows, contiguous
    _, Cin, Th, Wp = xm_ref.shape

    # Assemble the halo'd activation slab in VMEM (both pieces 8-row aligned).
    xscr_ref[:, :Th, :] = xm_ref[0]
    xscr_ref[:, Th:, :] = xh_ref[0]
    x = xscr_ref[...]                                  # (Cin, Th+HALO, Wp)

    # In-VMEM im2col: feature order f = (kh*K + kw)*Cin + ci matches w_ref.
    # Sublane/lane shifted slices land on XLU/ld-st slots, idle under the DMA.
    slabs = []
    for kh in range(K):
        rows = x[:, kh:kh + Th, :]                     # (Cin, Th, Wp)
        for kw in range(K):
            slabs.append(rows[:, :, kw:kw + Wo])       # (Cin, Th, Wo)
    patches = jnp.concatenate(slabs, axis=0)           # (K*K*Cin, Th, Wo)
    patches = patches.reshape(K * K * Cin, Th * Wo)

    # One MXU matmul per grid step, full K*K*Cin contraction, f32 accumulate.
    acc = jnp.dot(w_ref[...], patches, preferred_element_type=jnp.float32)
    acc = acc + b_ref[...]                             # (Cout, Th*Wo) + (Cout, 1)
    o_ref[0] = acc.reshape(-1, Th, Wo).astype(o_ref.dtype)


@functools.partial(jax.jit,
                   static_argnames=("scale_factor", "kernel_size", "use_bf16"))
def pixel_shuffle_pack(x_nchw, weight, bias, scale_factor, kernel_size,
                       use_bf16=True):
    """Equivalent of PixelShufflePack.forward (PyTorch NCHW in / NCHW out).

    x_nchw : (N, Cin, H, W)
    weight : (Cout*r*r, Cin, K, K)   (OIHW)
    bias   : (Cout*r*r,)
    returns: (N, Cout, H*r, W*r)
    """
    N, Cin, H, W = x_nchw.shape
    Cout_total = weight.shape[0]
    K = kernel_size
    r = scale_factor
    assert Cout_total % (r * r) == 0
    pad = (K - 1) // 2
    Ho = H + 2 * pad - K + 1          # general (also correct for even K)
    Wo = W + 2 * pad - K + 1
    Wp = W + 2 * pad
    KKC = K * K * Cin
    out_dtype = x_nchw.dtype
    cdt = jnp.bfloat16 if use_bf16 else x_nchw.dtype

    HALO = max(8, _round_up(K - 1, 8))      # halo block rows (8-row aligned)
    in_isz = jnp.dtype(cdt).itemsize
    out_isz = jnp.dtype(out_dtype).itemsize
    Th = _choose_row_tile(Ho, Wp, Wo, Cin, Cout_total, KKC, in_isz, out_isz, HALO)
    nt = pl.cdiv(Ho, Th)
    Ho_pad = nt * Th                        # padded conv-output rows
    Hp_pad = Ho_pad + HALO                  # padded-activation rows (incl. halo)

    # Early single cast (halves all downstream activation DMA when bf16), then
    # one zero-pad producing the NCHW padded activation of shape
    # (N, Cin, Hp_pad, Wp).  Extra bottom rows are zeros used only for the
    # halo over-read / garbage rows that are sliced off afterwards.
    x_c = x_nchw.astype(cdt)
    x_pad = jnp.pad(x_c, ((0, 0), (0, 0), (pad, Hp_pad - H - pad), (pad, pad)))

    # weight OIHW -> (Cout, kh, kw, ci) -> (Cout, KKC), matching the in-kernel
    # patch feature order.  (v5e note: pad KKC to 128 here if MXU-bound.)
    w2 = jnp.transpose(weight, (0, 2, 3, 1)).reshape(Cout_total, KKC).astype(cdt)
    b2 = bias.reshape(Cout_total, 1).astype(jnp.float32)

    vmem_cap = _vmem_capacity_bytes()
    vmem_limit = int(max(32 * 1024 * 1024, min(vmem_cap // 2, 64 * 1024 * 1024)))

    cost = pl.CostEstimate(
        flops=2 * N * Ho_pad * Wo * KKC * Cout_total,
        transcendentals=0,
        bytes_accessed=(N * Cin * (Ho_pad + nt * HALO) * Wp * in_isz   # activation
                        + Cout_total * KKC * in_isz + Cout_total * 4   # weights+bias
                        + N * Cout_total * Ho_pad * Wo * out_isz),     # conv output
    )

    th_blocks = Th // HALO
    kernel = functools.partial(_conv_rows_kernel, K=K, Wo=Wo)

    y = pl.pallas_call(
        kernel,
        out_shape=jax.ShapeDtypeStruct((N, Cout_total, Ho_pad, Wo), out_dtype),
        grid_spec=pltpu.PrefetchScalarGridSpec(
            num_scalar_prefetch=0,
            grid=(N, nt),
            in_specs=[
                # main row block of the padded activation
                pl.BlockSpec((1, Cin, Th, Wp), lambda n, t: (n, 0, t, 0)),
                # HALO-row block just below it (same array, finer row blocks)
                pl.BlockSpec((1, Cin, HALO, Wp),
                             lambda n, t: (n, 0, (t + 1) * th_blocks, 0)),
                # resident weight / bias
                pl.BlockSpec((Cout_total, KKC), lambda n, t: (0, 0)),
                pl.BlockSpec((Cout_total, 1), lambda n, t: (0, 0)),
            ],
            out_specs=pl.BlockSpec((1, Cout_total, Th, Wo),
                                   lambda n, t: (n, 0, t, 0)),
            scratch_shapes=[pltpu.VMEM((Cin, Th + HALO, Wp), cdt)],
        ),
        compiler_params=pltpu.CompilerParams(
            dimension_semantics=("parallel", "parallel"),
            vmem_limit_bytes=vmem_limit),
        cost_estimate=cost,
    )(x_pad, x_pad, w2, b2)

    # Pixel shuffle: drop the padded tail rows, then the single interface
    # transpose (r x r interleave) that PyTorch's NCHW output requires anyway.
    Co = Cout_total // (r * r)
    y = y[:, :, :Ho, :]
    y = y.reshape(N, Co, r, r, Ho, Wo)
    y = jnp.transpose(y, (0, 1, 4, 2, 5, 3))
    return y.reshape(N, Co, Ho * r, Wo * r)


if __name__ == "__main__":
    in_channels, out_channels, scale, K = 4, 4, 2, 3
    N, H, W = 2, 16, 16

    key = jax.random.PRNGKey(0)
    k1, k2, k3 = jax.random.split(key, 3)

    x = jax.random.normal(k1, (N, in_channels, H, W), jnp.float32)

    # deterministic synthetic conv params (shapes from the module __init__)
    fan_in = in_channels * K * K
    bound = 1.0 / (fan_in ** 0.5)
    weight = jax.random.uniform(
        k2, (out_channels * scale * scale, in_channels, K, K),
        jnp.float32, -bound, bound)
    bias = jax.random.uniform(
        k3, (out_channels * scale * scale,), jnp.float32, -bound, bound)

    # reference: XLA conv (NCHW) + manual pixel shuffle
    pad = (K - 1) // 2
    conv_ref = jax.lax.conv_general_dilated(
        x, weight, window_strides=(1, 1),
        padding=((pad, pad), (pad, pad)),
        dimension_numbers=("NCHW", "OIHW", "NCHW"))
    conv_ref = conv_ref + bias[None, :, None, None]
    ref = conv_ref.reshape(N, out_channels, scale, scale, H, W)
    ref = jnp.transpose(ref, (0, 1, 4, 2, 5, 3)).reshape(
        N, out_channels, H * scale, W * scale)

    # f32 path (tight tolerance) and the explicit bf16 path (looser tolerance)
    out_f32 = jax.block_until_ready(pixel_shuffle_pack(
        x, weight, bias, scale_factor=scale, kernel_size=K, use_bf16=False))
    out_bf16 = jax.block_until_ready(pixel_shuffle_pack(
        x, weight, bias, scale_factor=scale, kernel_size=K, use_bf16=True))

    assert out_f32.shape == (N, out_channels, H * scale, W * scale)
    assert out_f32.dtype == x.dtype and out_bf16.dtype == x.dtype
    assert jnp.allclose(out_f32, ref, atol=2e-3, rtol=2e-3)
    assert jnp.allclose(out_bf16, ref, atol=3e-2, rtol=3e-2)
    print("KERNEL_OK")
</pallas_src>

<mosaic_0001>
module attributes {stable_mosaic.version = 11 : i64} {
  func.func @_conv_rows_kernel(%arg0: i32, %arg1: i32, %arg2: memref<1x4x8x18xf32, #tpu.memory_space<vmem>>, %arg3: memref<1x4x8x18xf32, #tpu.memory_space<vmem>>, %arg4: memref<16x36xf32, #tpu.memory_space<vmem>>, %arg5: memref<16x1xf32, #tpu.memory_space<vmem>>, %arg6: memref<1x16x8x16xf32, #tpu.memory_space<vmem>>, %arg7: memref<4x16x18xf32, #tpu.memory_space<vmem>>) attributes {dimension_semantics = [#tpu.dimension_semantics<parallel>, #tpu.dimension_semantics<parallel>], iteration_bounds = array<i64: 2, 2>, scalar_prefetch = 0 : i64, scratch_operands = 1 : i64, tpu.core_type = #tpu.core_type<tc>, window_params = [{transform_indices = @transform_0, window_bounds = array<i64: 1, 4, 8, 18>}, {transform_indices = @transform_1, window_bounds = array<i64: 1, 4, 8, 18>}, {pipeline_mode = #tpu.pipeline_mode<synchronous>, transform_indices = @transform_2, window_bounds = array<i64: 16, 36>}, {pipeline_mode = #tpu.pipeline_mode<synchronous>, transform_indices = @transform_3, window_bounds = array<i64: 16, 1>}, {transform_indices = @transform_4, window_bounds = array<i64: 1, 16, 8, 16>}]} {
    %c0 = arith.constant 0 : index
    %c0_0 = arith.constant 0 : index
    %c0_1 = arith.constant 0 : index
    %c0_2 = arith.constant 0 : index
    %0 = vector.load %arg2[%c0, %c0_0, %c0_1, %c0_2] : memref<1x4x8x18xf32, #tpu.memory_space<vmem>>, vector<1x4x8x18xf32>
    %1 = vector.shape_cast %0 : vector<1x4x8x18xf32> to vector<4x8x18xf32>
    %c0_3 = arith.constant 0 : index
    %c0_4 = arith.constant 0 : index
    %c0_5 = arith.constant 0 : index
    %2 = vector.load %arg7[%c0_3, %c0_4, %c0_5] : memref<4x16x18xf32, #tpu.memory_space<vmem>>, vector<4x8x18xf32>
    tpu.vector_store %arg7[%c0_3, %c0_4, %c0_5], %1 {strides = array<i32>} : memref<4x16x18xf32, #tpu.memory_space<vmem>>, vector<4x8x18xf32>,
    %c0_6 = arith.constant 0 : index
    %c0_7 = arith.constant 0 : index
    %c0_8 = arith.constant 0 : index
    %c0_9 = arith.constant 0 : index
    %3 = vector.load %arg3[%c0_6, %c0_7, %c0_8, %c0_9] : memref<1x4x8x18xf32, #tpu.memory_space<vmem>>, vector<1x4x8x18xf32>
    %4 = vector.shape_cast %3 : vector<1x4x8x18xf32> to vector<4x8x18xf32>
    %c0_10 = arith.constant 0 : index
    %c8 = arith.constant 8 : index
    %c0_11 = arith.constant 0 : index
    %5 = vector.load %arg7[%c0_10, %c8, %c0_11] : memref<4x16x18xf32, #tpu.memory_space<vmem>>, vector<4x8x18xf32>
    tpu.vector_store %arg7[%c0_10, %c8, %c0_11], %4 {strides = array<i32>} : memref<4x16x18xf32, #tpu.memory_space<vmem>>, vector<4x8x18xf32>,
    %c0_12 = arith.constant 0 : index
    %c0_13 = arith.constant 0 : index
    %c0_14 = arith.constant 0 : index
    %6 = vector.load %arg7[%c0_12, %c0_13, %c0_14] : memref<4x16x18xf32, #tpu.memory_space<vmem>>, vector<4x16x18xf32>
    %7 = vector.extract_strided_slice %6 {offsets = [0, 0, 0], sizes = [4, 8, 18], strides = [1, 1, 1]} : vector<4x16x18xf32> to vector<4x8x18xf32>
    %8 = vector.extract_strided_slice %7 {offsets = [0, 0, 0], sizes = [4, 8, 16], strides = [1, 1, 1]} : vector<4x8x18xf32> to vector<4x8x16xf32>
    %9 = vector.extract_strided_slice %7 {offsets = [0, 0, 1], sizes = [4, 8, 16], strides = [1, 1, 1]} : vector<4x8x18xf32> to vector<4x8x16xf32>
    %10 = vector.extract_strided_slice %7 {offsets = [0, 0, 2], sizes = [4, 8, 16], strides = [1, 1, 1]} : vector<4x8x18xf32> to vector<4x8x16xf32>
    %11 = vector.extract_strided_slice %6 {offsets = [0, 1, 0], sizes = [4, 8, 18], strides = [1, 1, 1]} : vector<4x16x18xf32> to vector<4x8x18xf32>
    %12 = vector.extract_strided_slice %11 {offsets = [0, 0, 0], sizes = [4, 8, 16], strides = [1, 1, 1]} : vector<4x8x18xf32> to vector<4x8x16xf32>
    %13 = vector.extract_strided_slice %11 {offsets = [0, 0, 1], sizes = [4, 8, 16], strides = [1, 1, 1]} : vector<4x8x18xf32> to vector<4x8x16xf32>
    %14 = vector.extract_strided_slice %11 {offsets = [0, 0, 2], sizes = [4, 8, 16], strides = [1, 1, 1]} : vector<4x8x18xf32> to vector<4x8x16xf32>
    %15 = vector.extract_strided_slice %6 {offsets = [0, 2, 0], sizes = [4, 8, 18], strides = [1, 1, 1]} : vector<4x16x18xf32> to vector<4x8x18xf32>
    %16 = vector.extract_strided_slice %15 {offsets = [0, 0, 0], sizes = [4, 8, 16], strides = [1, 1, 1]} : vector<4x8x18xf32> to vector<4x8x16xf32>
    %17 = vector.extract_strided_slice %15 {offsets = [0, 0, 1], sizes = [4, 8, 16], strides = [1, 1, 1]} : vector<4x8x18xf32> to vector<4x8x16xf32>
    %18 = vector.extract_strided_slice %15 {offsets = [0, 0, 2], sizes = [4, 8, 16], strides = [1, 1, 1]} : vector<4x8x18xf32> to vector<4x8x16xf32>
    %19 = tpu.concatenate %8, %9, %10, %12, %13, %14, %16, %17, %18 in 0 : vector<4x8x16xf32>, vector<4x8x16xf32>, vector<4x8x16xf32>, vector<4x8x16xf32>, vector<4x8x16xf32>, vector<4x8x16xf32>, vector<4x8x16xf32>, vector<4x8x16xf32>, vector<4x8x16xf32> -> vector<36x8x16xf32>
    %20 = vector.shape_cast %19 : vector<36x8x16xf32> to vector<36x128xf32>
    %c0_15 = arith.constant 0 : index
    %c0_16 = arith.constant 0 : index
    %21 = vector.load %arg4[%c0_15, %c0_16] : memref<16x36xf32, #tpu.memory_space<vmem>>, vector<16x36xf32>
    %cst = arith.constant dense<0.000000e+00> : vector<16x128xf32>
    %22 = tpu.matmul %21, %20, %cst {dimension_numbers = #tpu.dot_dimension_numbers<[1], [0], [0], [1], [0, 0, 1, 1], [], []>} : vector<16x36xf32>, vector<36x128xf32>, vector<16x128xf32> -> vector<16x128xf32>
    %c0_17 = arith.constant 0 : index
    %c0_18 = arith.constant 0 : index
    %23 = vector.load %arg5[%c0_17, %c0_18] : memref<16x1xf32, #tpu.memory_space<vmem>>, vector<16x1xf32>
    %24 = vector.broadcast %23 : vector<16x1xf32> to vector<16x128xf32>
    %25 = arith.addf %22, %24 : vector<16x128xf32>
    %26 = vector.shape_cast %25 : vector<16x128xf32> to vector<16x8x16xf32>
    %c0_19 = arith.constant 0 : index
    %c0_20 = arith.constant 0 : index
    %c0_21 = arith.constant 0 : index
    %c0_22 = arith.constant 0 : index
    %27 = vector.load %arg6[%c0_19, %c0_20, %c0_21, %c0_22] : memref<1x16x8x16xf32, #tpu.memory_space<vmem>>, vector<1x16x8x16xf32>
    %28 = vector.shape_cast %27 : vector<1x16x8x16xf32> to vector<16x8x16xf32>
    %29 = vector.shape_cast %26 : vector<16x8x16xf32> to vector<1x16x8x16xf32>
    tpu.vector_store %arg6[%c0_19, %c0_20, %c0_21, %c0_22], %29 {strides = array<i32>} : memref<1x16x8x16xf32, #tpu.memory_space<vmem>>, vector<1x16x8x16xf32>,
    return
  }
  func.func @transform_0(%arg0: i32, %arg1: i32) -> (i32, i32, i32, i32) {
    %c0_i32 = arith.constant 0 : i32
    %c0_i32_0 = arith.constant 0 : i32
    %c0_i32_1 = arith.constant 0 : i32
    return %arg0, %c0_i32, %arg1, %c0_i32_0 : i32, i32, i32, i32
  }
  func.func @transform_1(%arg0: i32, %arg1: i32) -> (i32, i32, i32, i32) {
    %c1_i32 = arith.constant 1 : i32
    %0 = arith.addi %arg1, %c1_i32 : i32
    %c1_i32_0 = arith.constant 1 : i32
    %1 = arith.muli %0, %c1_i32_0 : i32
    %c0_i32 = arith.constant 0 : i32
    %c0_i32_1 = arith.constant 0 : i32
    %c0_i32_2 = arith.constant 0 : i32
    return %arg0, %c0_i32, %1, %c0_i32_1 : i32, i32, i32, i32
  }
  func.func @transform_2(%arg0: i32, %arg1: i32) -> (i32, i32) {
    %c0_i32 = arith.constant 0 : i32
    %c0_i32_0 = arith.constant 0 : i32
    %c0_i32_1 = arith.constant 0 : i32
    return %c0_i32, %c0_i32_0 : i32, i32
  }
  func.func @transform_3(%arg0: i32, %arg1: i32) -> (i32, i32) {
    %c0_i32 = arith.constant 0 : i32
    %c0_i32_0 = arith.constant 0 : i32
    %c0_i32_1 = arith.constant 0 : i32
    return %c0_i32, %c0_i32_0 : i32, i32
  }
  func.func @transform_4(%arg0: i32, %arg1: i32) -> (i32, i32, i32, i32) {
    %c0_i32 = arith.constant 0 : i32
    %c0_i32_0 = arith.constant 0 : i32
    %c0_i32_1 = arith.constant 0 : i32
    return %arg0, %c0_i32, %arg1, %c0_i32_0 : i32, i32, i32, i32
  }
}

</mosaic_0001>

<bundles_post_ra>
// kernel: pixel_shuffle_pack.1
= control target key start
LH: loop header
LB: loop body
LE: loop exit
PB: predicated region body
PF: predicated region fallthrough
CT: control target
= control target key end

     0   :  { %s2032_s15 = smov 0   ;;  %s2034_s16 = smov 0   ;;  %s2924_s0 = inlined_call_operand.vmem [shape: f32[2,4,24,18], index: 0, kind: input, shape index: {}, may-alias: {0,1}]   ;;  %s2925_s1 = inlined_call_operand.vmem [shape: f32[2,4,24,18], index: 1, kind: input, shape index: {}, may-alias: {0,1}]   ;;  %s2926_s2 = inlined_call_operand.vmem [shape: f32[16,36], index: 2, kind: input, shape index: {}]   ;;  %s2927_s3 = inlined_call_operand.vmem [shape: f32[16,1], index: 3, kind: input, shape index: {}]   ;;  %s2928_s4 = inlined_call_operand.vmem [shape: f32[2,16,16,16], index: 4, kind: output, shape index: {}]  }
   0x1   :  { %s2036_s17 = smov 0   ;;  %s2038_s18 = smov 0  }
   0x2   :  { %s2040_s19 = smov 0   ;;  %s2042_s20 = smov 0  }
   0x3   :  { %s2044_s21 = smov 0   ;;  %s2046_s22 = smov 0  }
   0x4   :  { %s2048_s23 = smov 0  }
   0x5 LB: > { %s1687_s24 = sadd.s32 4294967295, %s1993_s23   ;;  %s23_s25 = sadd.s32 1, %s1985_s21  ;;  %s1993_s23 = sphi %s2048_s23, %s14_s23   ;;  %s1989_s22 = sphi %s2046_s22, %s2944_s22   ;;  %s1985_s21 = sphi %s2044_s21, %s2943_s21   ;;  %s1981_s20 = sphi %s2042_s20, %s2942_s20   ;;  %s1977_s19 = sphi %s2040_s19, %s2941_s19   ;;  %s1973_s18 = sphi %s2038_s18, %s2940_s18   ;;  %s1969_s17 = sphi %s2036_s17, %s2939_s17   ;;  %s1965_s16 = sphi %s2034_s16, %s2938_s16   ;;  %s1961_s15 = sphi %s2032_s15, %s2937_s15  }
   0x6   : > { %p24_p0 = scmp.ge.s32.totalorder %s23_s25, 2  ;;  %s26_s26 = sadd.s32 1, %s1989_s22 }
   0x7   : > { %s35_s27 = sadd.s32 1, %s1973_s18  ;;  %p42_p1 = scmp.ne.s32.totalorder %s1973_s18, %s1969_s17 }
   0x8   : > { %s2083_s28 = scalar_select %p24_p0, 0, %s23_s25  }
   0x9   : > { %s2946_s26 = smov (!%p24_p0, %s26_s26), %s1989_s22  ;;  %p43_p2 = scmp.eq.s32.totalorder %s1993_s23, 0 }
   0xa   : > { %s31_s29 = ssub.s32 %s1985_s21, %s2083_s28  ;;  %p28_p3 = scmp.ge.s32.totalorder %s2946_s26, 2 }
   0xb   : > { %s59_s30 = sadd.s32 1, %s2083_s28  ;;  %p2095_p4 = por %p43_p2, %p42_p1 }
   0xc   : > { %s61_s6 = ssub.s32 %s23_s25, %s59_s30  ;;  %s2948_s26 = smov (%p28_p3, %s2946_s26), 0 }
   0xd   : > { %s65_s7 = sadd.s32 1, %s1965_s16  ;;  %p72_p5 = scmp.ne.s32.totalorder %s1965_s16, %s1961_s15 }
   0xe   : > { %s30_s8 = ssub.s32 %s1989_s22, %s2948_s26  ;;  %p146_p6 = scmp.eq.s32.totalorder %s1687_s24, 3 }
   0xf   : > { %s32_s9 = sor.u32 %s31_s29, %s30_s8  ;;  %s62_s10 = sor.u32 %s61_s6, %s30_s8 }
  0x10   : > { %p33_p7 = scmp.eq.s32.totalorder %s32_s9, 0  ;;  %p63_p8 = scmp.eq.s32.totalorder %s62_s10, 0 }
  0x11   : > { %p2108_p9 = por %p72_p5, %p43_p2  ;;  %p2115_p10 = por %p146_p6, %p42_p1 }
  0x12   : > { %s2120_s13 = scalar_select %p33_p7, %s1973_s18, %s35_s27  }
  0x13   : > { %s2123_s14 = scalar_select %p63_p8, %s1965_s16, %s65_s7  }
  0x14   : > { %p1690_p11 = scmp.ge.s32.totalorder %s1993_s23, 4 }
  0x16   : > { %174 = sbr.rel (%p1690_p11) target bundleno = 49 (0x31), region = 24 }
  0x1b   : > { %177 = sbr.rel (!%p2095_p4) target bundleno = 38 (0x26), region = 28  ;;  %s179_s24 = sand.u32 (%p2095_p4), 1, %s1973_s18  }
  0x1c   : > { %s1716_s25 = smul.u32 (%p2095_p4), 12, %s1989_s22  ;;  %s1691_s29 = sshll.u32 (%p2095_p4), %s179_s24, 5 }
  0x1d   : > { %s181_s7 = scalar_lea.vmem (%p2095_p4), [#allocation3], %s1691_s29 }
  0x1e   : > { %s183_s30 = sadd.s32 (%p2095_p4), %s1985_s21, %s1716_s25 }
  0x1f   : > { %s1692_s6 = sshll.u32 (%p2095_p4), %s183_s30, 3 }
  0x20   : > { %s185_s27 = scalar_lea.vmem %s2924_s0, %s1692_s6 }
  0x21   : > { %v220_v0 = vld [vmem:[%s185_s27] sm:$0xff]  ;;  %v222_v1 = vld [vmem:[%s185_s27 + $0x18] sm:$0xff]  ;;  %v224_v2 = vld [vmem:[%s185_s27 + $0x30] sm:$0xff] }
  0x22   : > { %221 = vst [vmem:[%s181_s7] sm:$0xff] %v220_v0  ;;  %v226_v3 = vld [vmem:[%s185_s27 + $0x48] sm:$0xff] }
  0x23   : > { %223 = vst [vmem:[%s181_s7 + $0x8] sm:$0xff] %v222_v1 }
  0x24   : > { %225 = vst [vmem:[%s181_s7 + $0x10] sm:$0xff] %v224_v2 }
  0x25   : > { %227 = vst [vmem:[%s181_s7 + $0x18] sm:$0xff] %v226_v3 }
  0x26 PF: > { %233 = sbr.rel (!%p2108_p9) target bundleno = 49 (0x31), region = 66  ;;  %s235_s5 = sand.u32 (%p2108_p9), 1, %s1965_s16  }
  0x27   : > { %s1614_s10 = smul.u32 (%p2108_p9), 12, %s1989_s22  ;;  %s1693_s24 = sshll.u32 (%p2108_p9), %s235_s5, 5 }
  0x28   : > { %s237_s9 = scalar_lea.vmem (%p2108_p9), [#allocation4], %s1693_s24 }
  0x29   : > { %s1615_s25 = sadd.s32 (%p2108_p9), %s1985_s21, %s1614_s10 }
  0x2a   : > { %s1694_s30 = sshll.u32 (%p2108_p9), %s1615_s25, 3 }
  0x2b   : > { %s1617_s29 = scalar_lea.vmem %s2925_s1, %s1694_s30 }
  0x2c   : > { %v1695_v4 = vld [vmem:[%s1617_s29 + $0x8] sm:$0xff]  ;;  %v1696_v5 = vld [vmem:[%s1617_s29 + $0x20] sm:$0xff]  ;;  %v1697_v6 = vld [vmem:[%s1617_s29 + $0x38] sm:$0xff] }
  0x2d   : > { %278 = vst [vmem:[%s237_s9] sm:$0xff] %v1695_v4  ;;  %v1698_v7 = vld [vmem:[%s1617_s29 + $0x50] sm:$0xff] }
  0x2e   : > { %280 = vst [vmem:[%s237_s9 + $0x8] sm:$0xff] %v1696_v5 }
  0x2f   : > { %282 = vst [vmem:[%s237_s9 + $0x10] sm:$0xff] %v1697_v6 }
  0x30   : > { %284 = vst [vmem:[%s237_s9 + $0x18] sm:$0xff] %v1698_v7 }
  0x31 PF: > { %p1699_p12 = scmp.ge.s32.totalorder %s1993_s23, 1  ;;  %p289_p13 = scmp.lt.s32.totalorder %s1993_s23, 5 }
  0x33   : > { %p290_p0 = pnand %p1699_p12, %p289_p13 }
  0x34   : > { %s296_s11 = sand.u32 (!%p290_p0), 1, %s1969_s17   ;;  %s303_s27 = sand.u32 (!%p290_p0), 1, %s1961_s15  }
  0x35   : > { %293 = sbr.rel (%p290_p0) target bundleno = 706 (0x2c2), region = 104  ;;  %s1700_s7 = sshll.u32 (!%p290_p0), %s296_s11, 5 }
  0x36   : > { %s1701_s5 = sshll.u32 (!%p290_p0), %s303_s27, 5  ;;  %s298_s10 = scalar_lea.vmem (!%p290_p0), [#allocation3], %s1700_s7 }
  0x37   : > { %s305_s24 = scalar_lea.vmem (!%p290_p0), [#allocation4], %s1701_s5  ;;  %s1995_s15 = smov (!%p290_p0), 126  }
  0x38   : > { %s1996_s25 = smov (!%p290_p0), 127   ;;  %s1999_s30 = smov (!%p290_p0), 32  }
  0x39   : > { %s2000_s6 = smov (!%p290_p0), 96   ;;  %s2001_s8 = smov (!%p290_p0), 64  }
  0x3a   : > { %vm336_vm0 = vcmask 146432   ;;  %v335_v8 = vld [vmem:[%s298_s10 + $0x18] sm:$0xff]  ;;  %v334_v10 = vld [vmem:[%s298_s10 + $0x10] sm:$0xff]  ;;  %v333_v12 = vld [vmem:[%s298_s10 + $0x8] sm:$0xff]  ;;  %vm430_vm1 = vcmask 1045504   ;;  %vm389_vm2 = vcmask 1046528  }
  0x3b   : > { %v344_v9 = vld [vmem:[%s305_s24 + $0x18] sm:$0xff]  ;;  %340 = vst.msk [vmem:[#allocation2 + $0x30] sm:$0xff] %vm336_vm0, %v335_v8  ;;  %v343_v11 = vld [vmem:[%s305_s24 + $0x10] sm:$0xff]  ;;  %v342_v13 = vld [vmem:[%s305_s24 + $0x8] sm:$0xff]  ;;  %vm472_vm3 = vcmask 1047556   ;;  %s2002_s29 = smov 16  }
  0x3c   : > { %348 = vst.msk [vmem:[#allocation2 + $0x38] sm:$0xff] %vm336_vm0, %v344_v9  ;;  %v332_v14 = vld [vmem:[%s298_s10] sm:$0xff]  ;;  %s2003_s9 = smov 48   ;;  %s2004_s27 = smov 80   ;;  %vm1116_vm4 = vcmask 130048   ;;  %vm1122_vm5 = vcmask 261120  }
  0x3d   : > { %339 = vst.msk [vmem:[#allocation2 + $0x20] sm:$0xff] %vm336_vm0, %v334_v10  ;;  %v341_v15 = vld [vmem:[%s305_s24] sm:$0xff]  ;;  %s2005_s7 = smov 112   ;;  %vm1128_vm6 = vcmask 392192   ;;  %vm1134_vm7 = vcmask 523264   ;;  %vm1146_vm8 = vcmask 785408  }
  0x3e   : > { %347 = vst.msk [vmem:[#allocation2 + $0x28] sm:$0xff] %vm336_vm0, %v343_v11  ;;  %v1997_v11 = vmov 1983009808   ;;  %vm1140_vm9 = vcmask 654336   ;;  %vm1152_vm10 = vcmask 916480   ;;  %vm1179_vm11 = vcmask 1043456  }
  0x3f   : > { %338 = vst.msk [vmem:[#allocation2 + $0x10] sm:$0xff] %vm336_vm0, %v333_v12  ;;  %v477_v12 = vunpack.c.l.s4 %v1997_v11  ;;  %vm1172_vm12 = vcmask 293888  }
  0x40   : > { %346 = vst.msk [vmem:[#allocation2 + $0x18] sm:$0xff] %vm336_vm0, %v342_v13 }
  0x41   : > { %337 = vst.msk [vmem:[#allocation2] sm:$0xff] %vm336_vm0, %v332_v14  ;;  %v2210_v13 = vunpack.c.0.s8 %v477_v12 }
  0x42   : > { %v2155_v16 = vld [vmem:[#allocation2 + $0x30] sm:$0xff]  ;;  %345 = vst.msk [vmem:[#allocation2 + $0x8] sm:$0xff] %vm336_vm0, %v341_v15 }
  0x43   : > { %v356_v17 = vld [vmem:[#allocation2 + $0x38] sm:$0xff]  ;;  %v440_v18 = vrot.slane %v2155_v16, 2  ;;  %v399_v19 = vrot.slane %v2155_v16, 1 }
  0x44   : > { %v400_v20 = vrot.slane %v356_v17, 1  ;;  %v441_v21 = vrot.slane %v356_v17, 2  ;;  %v2160_v22 = vld [vmem:[#allocation2 + $0x20] sm:$0xff] }
  0x45   : > { %v354_v23 = vld [vmem:[#allocation2 + $0x28] sm:$0xff]  ;;  %v437_v24 = vrot.slane %v2160_v22, 2  ;;  %v396_v29 = vrot.slane %v2160_v22, 1  ;;  %v1841_v7 = vpack.i.bf16 %v2155_v16, %v2160_v22 }
  0x46   : > { %v442_v25 = vsel %vm430_vm1, %v440_v18, %v441_v21  ;;  %v397_v26 = vrot.slane %v354_v23, 1  ;;  %v438_v27 = vrot.slane %v354_v23, 2  ;;  %v2164_v28 = vld [vmem:[#allocation2 + $0x10] sm:$0xff]  ;;  %v401_v31 = vsel %vm389_vm2, %v399_v19, %v400_v20 }
  0x47   : > { %465 = vrot.lane.b32.xlu0 %v442_v25, %s1995_s15  ;;  %v820_v30 = vrot.slane %v442_v25, 4  ;;  %v352_v32 = vld [vmem:[#allocation2 + $0x18] sm:$0xff]  ;;  %v434_v33 = vrot.slane %v2164_v28, 2  ;;  %v393_v34 = vrot.slane %v2164_v28, 1  ;;  %v620_v36 = vrot.slane %v401_v31, 4 }
  0x48   : > { %v439_v35 = vsel %vm430_vm1, %v437_v24, %v438_v27  ;;  %v394_v37 = vrot.slane %v352_v32, 1  ;;  %v435_v38 = vrot.slane %v352_v32, 2  ;;  %v2172_v39 = vld [vmem:[#allocation2] sm:$0xff]  ;;  %v398_v46 = vsel %vm389_vm2, %v396_v29, %v397_v26 }
  0x49   : > { %463 = vrot.lane.b32.xlu1 %v439_v35, %s1995_s15  ;;  %v808_v40 = vrot.slane %v439_v35, 4  ;;  %v350_v41 = vld [vmem:[#allocation2 + $0x8] sm:$0xff]  ;;  %v431_v42 = vrot.slane %v2172_v39, 2  ;;  %v1801_v43 = vpack.i.bf16 %v401_v31, %v439_v35  ;;  %v608_v52 = vrot.slane %v398_v46, 4 }
  0x4a   : > { %v436_v44 = vsel %vm430_vm1, %v434_v33, %v435_v38  ;;  %v432_v45 = vrot.slane %v350_v41, 2  ;;  %v391_v49 = vrot.slane %v350_v41, 1  ;;  %v395_v50 = vsel %vm389_vm2, %v393_v34, %v394_v37 }
  0x4b   : > { %v821_v47 = vsel %vm472_vm3, %v820_v30, %v436_v44  ;;  %v822_v48 = vrot.slane %v436_v44, 4  ;;  %v621_v53 = vsel %vm472_vm3, %v620_v36, %v395_v50  ;;  %v390_v54 = vrot.slane %v2172_v39, 1 }
  0x4c   : > { %v433_v51 = vsel %vm430_vm1, %v431_v42, %v432_v45  ;;  %v622_v59 = vrot.slane %v395_v50, 4  ;;  %v1811_v1 = vpack.i.bf16 %v2155_v16, %v398_v46  ;;  %v1816_v3 = vpack.i.bf16 %v395_v50, %v436_v44 }
  0x4d   : > { %v823_v55 = vsel %vm472_vm3, %v442_v25, %v822_v48  ;;  %v1806_v56 = vpack.i.bf16 %v433_v51, %v442_v25  ;;  %v809_v57 = vsel %vm472_vm3, %v808_v40, %v433_v51  ;;  %v810_v58 = vrot.slane %v433_v51, 4 }
  0x4e   : > { %v623_v61 = vsel %vm472_vm3, %v401_v31, %v622_v59  ;;  %v392_v62 = vsel %vm389_vm2, %v390_v54, %v391_v49  ;;  %v1831_v6 = vpack.i.bf16 %v2164_v28, %v395_v50  ;;  %v1836_v8 = vpack.i.bf16 %v2172_v39, %v2160_v22 }
  0x4f   : > { %461 = vrot.lane.b32.xlu0 %v436_v44, %s1995_s15  ;;  %1807 = vrot.lane.b32.xlu2 %v1806_v56, %s1996_s25  ;;  %v2187_v60 = vsel %vm472_vm3, %v439_v35, %v810_v58  ;;  %v609_v63 = vsel %vm472_vm3, %v608_v52, %v392_v62  ;;  %v610_v0 = vrot.slane %v392_v62, 4  ;;  %v1826_v4 = vpack.i.bf16 %v392_v62, %v401_v31 }
  0x50   : > { %v1821_v5 = vpack.i.bf16 %v392_v62, %v398_v46  ;;  %v1846_v9 = vpack.i.bf16 %v2164_v28, %v2172_v39  ;;  %v615_v15 = vperm.slane %v609_v63, %v2210_v13  ;;  %v627_v17 = vperm.slane %v621_v53, %v2210_v13 }
  0x51   : > { %1802 = vrot.lane.b32.xlu1 %v1801_v43, %s1996_s25  ;;  %v2194_v2 = vsel %vm472_vm3, %v398_v46, %v610_v0  ;;  %v2223_v26 = vperm.slane %v821_v47, %v2210_v13  ;;  %v2226_v29 = vperm.slane %v809_v57, %v2210_v13  ;;  %v1998_v32 = vmov 1934713408  }
  0x52   : > { %v658_v18 = vrot.slane %v615_v15, 4  ;;  %v656_v20 = vrot.slane %v627_v17, 4  ;;  %v525_v33 = vunpack.c.l.s4 %v1998_v32  ;;  %v2233_v37 = vperm.slane %v823_v55, %v2210_v13 }
  0x53   : > { %v471_v41 = vrot.slane %v2160_v22, 4  ;;  %v2244_v46 = vperm.slane %v623_v61, %v2210_v13  ;;  %v484_v55 = vrot.slane %v2155_v16, 4 }
  0x54   : > { %v2215_v19 = vsel %vm472_vm3, %v627_v17, %v658_v18  ;;  %v2220_v25 = vsel %vm472_vm3, %v656_v20, %v615_v15  ;;  %v2249_v50 = vunpack.c.0.s8 %v525_v33  ;;  %v474_v20 = vrot.slane %v2172_v39, 4 }
  0x55   : > { %v473_v61 = vsel %vm472_vm3, %v471_v41, %v2172_v39  ;;  %v485_v11 = vsel %vm472_vm3, %v484_v55, %v2164_v28 }
  0x56   : > { %v2310_v41 = vperm.slane %v2220_v25, %v2249_v50  ;;  %v486_v25 = vrot.slane %v2164_v28, 4 }
  0x57   : > { %1812 = vrot.lane.b32.xlu0 %v1811_v1, %s1995_s15  ;;  %459 = vrot.lane.b32.xlu2 %v433_v51, %s1995_s15 }
  0x59   : > { %1817 = vrot.lane.b32.xlu1 %v1816_v3, %s1996_s25 }
  0x5f   : > { %1827 = vrot.lane.b32.xlu0 %v1826_v4, %s1995_s15  ;;  %1822 = vrot.lane.b32.xlu2 %v1821_v5, %s1996_s25 }
  0x61   : > { %1832 = vrot.lane.b32.xlu1 %v1831_v6, %s1995_s15 }
  0x67   : > { %1842 = vrot.lane.b32.xlu0 %v1841_v7, %s1996_s25  ;;  %1837 = vrot.lane.b32.xlu2 %v1836_v8, %s1995_s15 }
  0x69   : > { %1847 = vrot.lane.b32.xlu1 %v1846_v9, %s1996_s25  ;;  %v479_v9 = vperm.slane %v473_v61, %v2210_v13 }
  0xa9   : > { %v2208_v10 = vpop.permute.xlu2 %1807 }
  0xaa   : > { %v1810_v34 = vunpack.i.h.bf16 %v2208_v10  ;;  %v1809_v43 = vunpack.i.l.bf16 %v2208_v10 }
  0xac   : > { %v834_v52 = vrot.slane %v1810_v34, 4  ;;  %v844_v62 = vrot.slane %v1809_v43, 4 }
  0xb1   : > { %v460_v14 = vpop.permute.xlu2 %459 }
  0xb2   : > { %v922_v24 = vrot.slane %v460_v14, 4 }
  0xb9   : > { %v466_v21 = vpop.permute.xlu0 %465  ;;  %v2217_v23 = vpop.permute.xlu2 %1822 }
  0xba   : > { %v1824_v31 = vunpack.i.l.bf16 %v2217_v23  ;;  %v932_v44 = vrot.slane %v466_v21, 4  ;;  %v1825_v45 = vunpack.i.h.bf16 %v2217_v23 }
  0xbb   : > { %v464_v27 = vpop.permute.xlu1 %463 }
  0xbc   : > { %v920_v30 = vrot.slane %v464_v27, 4  ;;  %v923_v36 = vsel %vm472_vm3, %v464_v27, %v922_v24  ;;  %v696_v49 = vrot.slane %v1824_v31, 4  ;;  %v698_v1 = vrot.slane %v1825_v45, 4 }
  0xbd   : > { %v931_v47 = vperm.slane %v923_v36, %v2210_v13  ;;  %v668_v24 = vrot.slane %v2244_v46, 4  ;;  %v2306_v36 = vperm.slane %v2215_v19, %v2249_v50  ;;  %v475_v19 = vsel %vm472_vm3, %v2160_v22, %v474_v20 }
  0xbe   : > { %v921_v35 = vsel %vm472_vm3, %v920_v30, %v460_v14  ;;  %v697_v5 = vsel %vm472_vm3, %v696_v49, %v1825_v45  ;;  %v2316_v45 = vsel %vm472_vm3, %v1824_v31, %v698_v1  ;;  %v2336_v1 = vperm.slane %v475_v19, %v2210_v13 }
  0xbf   : > { %v2237_v40 = vperm.slane %v921_v35, %v2210_v13  ;;  %v958_v3 = vrot.slane %v931_v47, 4  ;;  %v2293_v30 = vperm.slane %v697_v5, %v2210_v13  ;;  %v491_v35 = vperm.slane %v485_v11, %v2210_v13 }
  0xc1   : > { %v462_v48 = vpop.permute.xlu0 %461  ;;  %v2251_v51 = vpop.permute.xlu2 %1837  ;;  %v946_v56 = vrot.slane %v2237_v40, 4  ;;  %v520_v31 = vrot.slane %v491_v35, 4 }
  0xc2   : > { %v933_v53 = vsel %vm472_vm3, %v932_v44, %v462_v48  ;;  %v934_v54 = vrot.slane %v462_v48, 4  ;;  %v1839_v59 = vunpack.i.l.bf16 %v2251_v51  ;;  %v1840_v8 = vunpack.i.h.bf16 %v2251_v51 }
  0xc3   : > { %v2256_v57 = vpop.permute.xlu1 %1802  ;;  %v2259_v58 = vperm.slane %v933_v53, %v2210_v13 }
  0xc4   : > { %v1804_v63 = vunpack.i.l.bf16 %v2256_v57  ;;  %v935_v0 = vsel %vm472_vm3, %v466_v21, %v934_v54  ;;  %v584_v17 = vrot.slane %v1839_v59, 4  ;;  %v2288_v21 = vperm.slane %v2194_v2, %v2210_v13 }
  0xc5   : > { %v943_v4 = vperm.slane %v935_v0, %v2210_v13  ;;  %v947_v6 = vsel %vm472_vm3, %v2259_v58, %v946_v56  ;;  %v1805_v27 = vunpack.i.h.bf16 %v2256_v57  ;;  %v522_v2 = vrot.slane %v479_v9, 4 }
  0xc6   : > { %v2273_v7 = vperm.slane %v947_v6, %v2249_v50  ;;  %v832_v12 = vrot.slane %v1804_v63, 4  ;;  %v586_v48 = vrot.slane %v1840_v8, 4  ;;  %v585_v49 = vsel %vm472_vm3, %v584_v17, %v1840_v8 }
  0xc7   : > { %v956_v14 = vrot.slane %v943_v4, 4  ;;  %v959_v15 = vsel %vm472_vm3, %v943_v4, %v958_v3  ;;  %v669_v54 = vsel %vm472_vm3, %v668_v24, %v2288_v21  ;;  %v835_v55 = vsel %vm472_vm3, %v1804_v63, %v834_v52 }
  0xc8   : > { %1009 = vrot.lane.b32.xlu0 %v2273_v7, %s1999_s30  ;;  %v2283_v18 = vperm.slane %v959_v15, %v2249_v50  ;;  %v833_v44 = vsel %vm472_vm3, %v832_v12, %v1810_v34  ;;  %v708_v34 = vrot.slane %v1805_v27, 4  ;;  %v591_v57 = vperm.slane %v585_v49, %v2210_v13 }
  0xc9   : > { %v2295_v32 = vpop.permute.xlu0 %1812  ;;  %v957_v33 = vsel %vm472_vm3, %v956_v14, %v931_v47  ;;  %v2329_v56 = vperm.slane %v833_v44, %v2210_v13  ;;  %v523_v61 = vsel %vm472_vm3, %v491_v35, %v522_v2  ;;  %v587_v28 = vsel %vm472_vm3, %v1839_v59, %v586_v48 }
  0xca   : > { %1089 = vrot.lane.b32.xlu2 %v2283_v18, %s2000_s6  ;;  %v2302_v39 = vperm.slane %v957_v33, %v2249_v50  ;;  %v1815_v22 = vunpack.i.h.bf16 %v2295_v32  ;;  %v944_v3 = vrot.slane %v2259_v58, 4  ;;  %v2342_v5 = vperm.slane %v835_v55, %v2210_v13 }
  0xcb   : > { %v1818_v47 = vpop.permute.xlu1 %1817  ;;  %v1814_v6 = vunpack.i.l.bf16 %v2295_v32  ;;  %v2348_v11 = vperm.slane %v523_v61, %v2249_v50  ;;  %v521_v59 = vsel %vm472_vm3, %v520_v31, %v479_v9  ;;  %v882_v12 = vrot.slane %v2329_v56, 4 }
  0xcc   : > { %v1820_v51 = vunpack.i.h.bf16 %v1818_v47  ;;  %v1819_v53 = vunpack.i.l.bf16 %v1818_v47  ;;  %1049 = vrot.lane.b32.xlu1 %v2302_v39, %s2001_s8  ;;  %v2353_v14 = vperm.slane %v587_v28, %v2210_v13  ;;  %v634_v15 = vrot.slane %v591_v57, 4 }
  0xcd   : > { %v596_v17 = vrot.slane %v1815_v22, 4  ;;  %v2369_v47 = vperm.slane %v521_v59, %v2249_v50  ;;  %v574_v48 = vrot.slane %v2348_v11, 4 }
  0xce   : > { %v710_v0 = vrot.slane %v1820_v51, 4  ;;  %v709_v4 = vsel %vm472_vm3, %v708_v34, %v1820_v51  ;;  %v845_v52 = vsel %vm472_vm3, %v844_v62, %v1819_v53  ;;  %v846_v63 = vrot.slane %v1819_v53, 4 }
  0xcf   : > { %v487_v62 = vsel %vm472_vm3, %v2155_v16, %v486_v25  ;;  %v2359_v24 = vperm.slane %v709_v4, %v2210_v13  ;;  %v2362_v33 = vperm.slane %v845_v52, %v2210_v13  ;;  %v720_v16 = vrot.slane %v1814_v6, 4 }
  0xd0   : > { %v711_v20 = vsel %vm472_vm3, %v1805_v27, %v710_v0  ;;  %v847_v9 = vsel %vm472_vm3, %v1809_v43, %v846_v63  ;;  %v2376_v49 = vperm.slane %v487_v62, %v2210_v13  ;;  %v2383_v53 = vperm.slane %v669_v54, %v2249_v50 }
  0xd1   : > { %v2345_v8 = vpop.permute.xlu0 %1827  ;;  %v2379_v10 = vperm.slane %v711_v20, %v2210_v13  ;;  %v744_v19 = vrot.slane %v2359_v24, 4  ;;  %v2387_v25 = vperm.slane %v847_v9, %v2210_v13  ;;  %v2393_v55 = vsel %vm472_vm3, %v2362_v33, %v882_v12 }
  0xd2   : > { %v1830_v44 = vunpack.i.h.bf16 %v2345_v8  ;;  %v1829_v27 = vunpack.i.l.bf16 %v2345_v8  ;;  %v570_v54 = vrot.slane %v2369_v47, 4  ;;  %v532_v12 = vrot.slane %v2376_v49, 4 }
  0xd3   : > { %v1833_v35 = vpop.permute.xlu1 %1832 }
  0xd4   : > { %v1835_v2 = vunpack.i.h.bf16 %v1833_v35  ;;  %v721_v0 = vsel %vm472_vm3, %v720_v16, %v1830_v44  ;;  %v1834_v52 = vunpack.i.l.bf16 %v1833_v35  ;;  %v732_v63 = vrot.slane %v1829_v27, 4 }
  0xd5   : > { %v722_v20 = vrot.slane %v1830_v44, 4  ;;  %v688_v16 = vrot.slane %v2383_v53, 4 }
  0xd6   : > { %v597_v43 = vsel %vm472_vm3, %v596_v17, %v1835_v2  ;;  %v598_v51 = vrot.slane %v1835_v2, 4  ;;  %v734_v23 = vrot.slane %v1834_v52, 4 }
  0xd7   : > { %v603_v31 = vperm.slane %v597_v43, %v2210_v13 }
  0xd8   : > { %v599_v61 = vsel %vm472_vm3, %v1815_v22, %v598_v51  ;;  %v2404_v22 = vperm.slane %v721_v0, %v2210_v13 }
  0xd9   : > { %v2399_v28 = vperm.slane %v599_v61, %v2210_v13  ;;  %v632_v4 = vrot.slane %v603_v31, 4  ;;  %v1843_v8 = vpop.permute.xlu0 %1842  ;;  %v635_v43 = vsel %vm472_vm3, %v603_v31, %v634_v15 }
  0xda   : > { %v1845_v62 = vunpack.i.h.bf16 %v1843_v8  ;;  %v1844_v17 = vunpack.i.l.bf16 %v1843_v8  ;;  %v733_v8 = vsel %vm472_vm3, %v732_v63, %v1834_v52  ;;  %v643_v31 = vperm.slane %v635_v43, %v2249_v50 }
  0xdb   : > { %v1848_v9 = vpop.permute.xlu1 %1847  ;;  %v633_v2 = vsel %vm472_vm3, %v632_v4, %v591_v57  ;;  %v644_v59 = vrot.slane %v2399_v28, 4  ;;  %v533_v4 = vsel %vm472_vm3, %v532_v12, %v2336_v1  ;;  %v770_v12 = vrot.slane %v2404_v22, 4 }
  0xdc   : > { %v1850_v35 = vunpack.i.h.bf16 %v1848_v9  ;;  %v1849_v51 = vunpack.i.l.bf16 %v1848_v9  ;;  %v508_v61 = vrot.slane %v1845_v62, 4  ;;  %v496_v42 = vrot.slane %v1844_v17, 4 }
  0xdd   : > { %v2413_v38 = vperm.slane %v633_v2, %v2249_v50  ;;  %v945_v2 = vsel %vm472_vm3, %v944_v3, %v2237_v40  ;;  %v645_v58 = vsel %vm472_vm3, %v644_v59, %v2353_v14  ;;  %v686_v3 = vrot.slane %v643_v31, 4 }
  0xde   : > { %v510_v44 = vrot.slane %v1850_v35, 4  ;;  %v498_v34 = vrot.slane %v1849_v51, 4  ;;  %v509_v0 = vsel %vm472_vm3, %v508_v61, %v1850_v35  ;;  %v497_v15 = vsel %vm472_vm3, %v496_v42, %v1849_v51 }
  0xdf   : > { %v515_v57 = vperm.slane %v509_v0, %v2210_v13  ;;  %v503_v63 = vperm.slane %v497_v15, %v2210_v13  ;;  %v735_v35 = vsel %vm472_vm3, %v1829_v27, %v734_v23  ;;  %v739_v42 = vperm.slane %v733_v8, %v2210_v13 }
  0xe0   : > { %v511_v9 = vsel %vm472_vm3, %v1845_v62, %v510_v44  ;;  %v499_v52 = vsel %vm472_vm3, %v1844_v17, %v498_v34  ;;  %v723_v62 = vsel %vm472_vm3, %v1814_v6, %v722_v20  ;;  %v682_v17 = vrot.slane %v2413_v38, 4 }
  0xe1   : > { %v2430_v43 = vperm.slane %v511_v9, %v2210_v13  ;;  %v544_v51 = vrot.slane %v515_v57, 4  ;;  %v546_v34 = vrot.slane %v503_v63, 4  ;;  %v2440_v23 = vperm.slane %v499_v52, %v2210_v13 }
  0xe2   : > { %v2445_v32 = vperm.slane %v735_v35, %v2210_v13  ;;  %v768_v61 = vrot.slane %v739_v42, 4  ;;  %v2455_v44 = vperm.slane %v645_v58, %v2249_v50  ;;  %v683_v15 = vsel %vm472_vm3, %v2310_v41, %v682_v17 }
  0xe3   : > { %v556_v40 = vrot.slane %v2430_v43, 4  ;;  %v545_v27 = vsel %vm472_vm3, %v544_v51, %v503_v63  ;;  %v547_v6 = vsel %vm472_vm3, %v515_v57, %v546_v34  ;;  %v745_v9 = vsel %vm472_vm3, %v744_v19, %v2293_v30 }
  0xe4   : > { %v2449_v20 = vperm.slane %v545_v27, %v2249_v50  ;;  %v555_v8 = vperm.slane %v547_v6, %v2249_v50  ;;  %v687_v63 = vsel %vm472_vm3, %v2306_v36, %v686_v3  ;;  %v2474_v34 = vperm.slane %v533_v4, %v2249_v50 }
  0xe5   : > { %v557_v59 = vsel %vm472_vm3, %v556_v40, %v2440_v23  ;;  %v2932_v58 = vrot.slane %v2223_v26, 4  ;;  %v684_v40 = vrot.slane %v2306_v36, 4  ;;  %v2487_v3 = vperm.slane %v745_v9, %v2249_v50 }
  0xe6   : > { %v571_v0 = vsel %vm472_vm3, %v2449_v20, %v570_v54  ;;  %v2462_v57 = vperm.slane %v557_v59, %v2249_v50  ;;  %v575_v52 = vsel %vm472_vm3, %v555_v8, %v574_v48  ;;  %v572_v54 = vrot.slane %v555_v8, 4 }
  0xe7   : > { %v1851_v35 = vpack.i.bf16 %v571_v0, %v683_v15  ;;  %v1861_v51 = vpack.i.bf16 %v575_v52, %v687_v63  ;;  %v857_v19 = vsel %vm472_vm3, %v2932_v58, %v2226_v29  ;;  %v2483_v48 = vperm.slane %v945_v2, %v2249_v50 }
  0xe8   : > { %v576_v17 = vrot.slane %v2462_v57, 4  ;;  %v769_v4 = vsel %vm472_vm3, %v768_v61, %v2404_v22  ;;  %v780_v27 = vrot.slane %v2445_v32, 4  ;;  %v689_v2 = vsel %vm472_vm3, %v688_v16, %v2455_v44 }
  0xe9   : > { %1852 = vrot.lane.b32.xlu0 %v1851_v35, %s2002_s29  ;;  %1862 = vrot.lane.b32.xlu2 %v1861_v51, %s2003_s9  ;;  %v2500_v36 = vperm.slane %v857_v19, %v2249_v50  ;;  %v573_v22 = vsel %vm472_vm3, %v572_v54, %v2348_v11  ;;  %v2933_v61 = vrot.slane %v2362_v33, 4  ;;  %v771_v0 = vsel %vm472_vm3, %v739_v42, %v770_v12 }
  0xea   : > { %v577_v6 = vsel %vm472_vm3, %v576_v17, %v2474_v34  ;;  %v892_v15 = vrot.slane %v2387_v25, 4  ;;  %v2511_v9 = vperm.slane %v723_v62, %v2210_v13  ;;  %v2514_v16 = vperm.slane %v769_v4, %v2249_v50 }
  0xeb   : > { %v1866_v59 = vpack.i.bf16 %v577_v6, %v689_v2  ;;  %v881_v8 = vsel %vm472_vm3, %v2933_v61, %v2329_v56  ;;  %v779_v52 = vperm.slane %v771_v0, %v2249_v50  ;;  %v968_v11 = vrot.slane %v2483_v48, 4 }
  0xec   : > { %v685_v33 = vsel %vm472_vm3, %v684_v40, %v643_v31  ;;  %v794_v56 = vrot.slane %v2487_v3, 4  ;;  %v2934_v42 = vrot.slane %v2226_v29, 4  ;;  %v2526_v63 = vperm.slane %v881_v8, %v2249_v50 }
  0xed   : > { %1867 = vrot.lane.b32.xlu1 %v1866_v59, %s2001_s8  ;;  %v1856_v62 = vpack.i.bf16 %v573_v22, %v685_v33  ;;  %v906_v35 = vrot.slane %v2500_v36, 4  ;;  %v891_v54 = vperm.slane %v2393_v55, %v2249_v50  ;;  %v2935_v51 = vrot.slane %v2293_v30, 4 }
  0xee   : > { %v859_v12 = vsel %vm472_vm3, %v2223_v26, %v2934_v42  ;;  %v781_v29 = vsel %vm472_vm3, %v780_v27, %v2511_v9  ;;  %v819_v26 = vperm.slane %v2187_v60, %v2210_v13  ;;  %v868_v17 = vrot.slane %v2233_v37, 4 }
  0xef   : > { %v747_v31 = vsel %vm472_vm3, %v2359_v24, %v2935_v51  ;;  %v795_v58 = vsel %vm472_vm3, %v2514_v16, %v794_v56  ;;  %v796_v19 = vrot.slane %v779_v52, 4  ;;  %v787_v40 = vperm.slane %v781_v29, %v2249_v50 }
  0xf0   : > { %v893_v30 = vsel %vm472_vm3, %v892_v15, %v2342_v5  ;;  %v707_v24 = vperm.slane %v2316_v45, %v2210_v13  ;;  %v969_v55 = vsel %vm472_vm3, 0.0, %v968_v11  ;;  %v869_v60 = vsel %vm472_vm3, %v868_v17, %v819_v26 }
  0xf1   : > { %1857 = vrot.lane.b32.xlu0 %v1856_v62, %s1999_s30  ;;  %989 = vrot.lane.b32.xlu2 %v969_v55, %s2002_s29  ;;  %v907_v4 = vsel %vm472_vm3, %v2526_v63, %v906_v35  ;;  %v755_v27 = vperm.slane %v747_v31, %v2249_v50  ;;  %v908_v6 = vrot.slane %v891_v54, 4  ;;  %v899_v2 = vperm.slane %v893_v30, %v2249_v50 }
  0xf2   : > { %v1871_v59 = vpack.i.bf16 %v795_v58, %v907_v4  ;;  %v2936_v22 = vrot.slane %v2379_v10, 4  ;;  %v867_v8 = vperm.slane %v859_v12, %v2249_v50  ;;  %v800_v0 = vrot.slane %v787_v40, 4 }
  0xf3   : > { %v797_v61 = vsel %vm472_vm3, %v796_v19, %v755_v27  ;;  %v970_v15 = vrot.slane %v2273_v7, 4  ;;  %v912_v56 = vrot.slane %v899_v2, 4  ;;  %v758_v42 = vrot.slane %v707_v24, 4 }
  0xf4   : > { %v757_v45 = vsel %vm472_vm3, %v2936_v22, %v707_v24  ;;  %v909_v11 = vsel %vm472_vm3, %v908_v6, %v867_v8  ;;  %v870_v35 = vrot.slane %v819_v26, 4  ;;  %v875_v31 = vperm.slane %v869_v60, %v2249_v50 }
  0xf5   : > { %1872 = vrot.lane.b32.xlu1 %v1871_v59, %s2002_s29  ;;  %v763_v33 = vperm.slane %v757_v45, %v2249_v50  ;;  %v1876_v62 = vpack.i.bf16 %v797_v61, %v909_v11  ;;  %v910_v29 = vrot.slane %v867_v8, 4  ;;  %v782_v12 = vrot.slane %v2511_v9, 4 }
  0xf6   : > { %v680_v17 = vrot.slane %v2310_v41, 4  ;;  %v971_v58 = vsel %vm472_vm3, 0.0, %v970_v15  ;;  %v871_v7 = vsel %vm472_vm3, %v2233_v37, %v870_v35  ;;  %v894_v19 = vrot.slane %v2342_v5, 4 }
  0xf7   : > { %v801_v51 = vsel %vm472_vm3, %v800_v0, %v763_v33  ;;  %v568_v26 = vrot.slane %v2449_v20, 4  ;;  %v913_v30 = vsel %vm472_vm3, %v912_v56, %v875_v31  ;;  %v798_v24 = vrot.slane %v755_v27, 4 }
  0xf8   : > { %v558_v9 = vrot.slane %v2440_v23, 4  ;;  %v1886_v55 = vpack.i.bf16 %v801_v51, %v913_v30  ;;  %v972_v41 = vrot.slane %v2302_v39, 4  ;;  %v759_v60 = vsel %vm472_vm3, %v2379_v10, %v758_v42 }
  0xf9   : > { %1877 = vrot.lane.b32.xlu0 %v1876_v62, %s1999_s30  ;;  %1029 = vrot.lane.b32.xlu2 %v971_v58, %s2003_s9  ;;  %v792_v4 = vrot.slane %v2514_v16, 4  ;;  %v904_v37 = vrot.slane %v2526_v63, 4  ;;  %v799_v5 = vsel %vm472_vm3, %v779_v52, %v798_v24  ;;  %v911_v20 = vsel %vm472_vm3, %v891_v54, %v910_v29 }
  0xfa   : > { %v802_v6 = vrot.slane %v763_v33, 4  ;;  %v914_v27 = vrot.slane %v875_v31, 4  ;;  %v783_v23 = vsel %vm472_vm3, %v2445_v32, %v782_v12  ;;  %v670_v39 = vrot.slane %v2288_v21, 4 }
  0xfb   : > { %v767_v59 = vperm.slane %v759_v60, %v2249_v50  ;;  %v879_v10 = vperm.slane %v871_v7, %v2249_v50  ;;  %v2592_v16 = vsel %vm472_vm3, %v568_v26, %v2369_v47  ;;  %v2596_v52 = vsel %vm472_vm3, %v680_v17, %v2413_v38 }
  0xfc   : > { %v1881_v63 = vpack.i.bf16 %v799_v5, %v911_v20  ;;  %v973_v54 = vsel %vm472_vm3, 0.0, %v972_v41  ;;  %v895_v32 = vsel %vm472_vm3, %v2387_v25, %v894_v19  ;;  %v671_v21 = vsel %vm472_vm3, %v2244_v46, %v670_v39 }
  0xfd   : > { %1887 = vrot.lane.b32.xlu1 %v1886_v55, %s2001_s8  ;;  %v803_v22 = vsel %vm472_vm3, %v787_v40, %v802_v6  ;;  %v791_v45 = vperm.slane %v783_v23, %v2249_v50  ;;  %v2607_v47 = vsel %vm472_vm3, %v792_v4, %v2487_v3  ;;  %v2611_v38 = vsel %vm472_vm3, %v904_v37, %v2500_v36 }
  0xfe   : > { %v559_v61 = vsel %vm472_vm3, %v2430_v43, %v558_v9  ;;  %v534_v46 = vrot.slane %v2336_v1, 4  ;;  %v915_v25 = vsel %vm472_vm3, %v899_v2, %v914_v27  ;;  %v806_v40 = vrot.slane %v767_v59, 4 }
  0xff   : > { %v903_v3 = vperm.slane %v895_v32, %v2249_v50  ;;  %v918_v8 = vrot.slane %v879_v10, 4  ;;  %v646_v0 = vrot.slane %v2353_v14, 4  ;;  %v1891_v36 = vpack.i.bf16 %v803_v22, %v915_v25  ;;  %v1160_v32 = vld [vmem:[%s2927_s3] sm:$0xff] }
 0x100   : > { %v807_v15 = vsel %vm472_vm3, %v791_v45, %v806_v40  ;;  %v804_v11 = vrot.slane %v791_v45, 4  ;;  %v567_v43 = vperm.slane %v559_v61, %v2249_v50  ;;  %v974_v1 = vrot.slane %v2283_v18, 4 }
 0x101   : > { %1069 = vrot.lane.b32.xlu0 %v973_v54, %s2004_s27  ;;  %1882 = vrot.lane.b32.xlu2 %v1881_v63, %s2003_s9  ;;  %v535_v33 = vsel %vm472_vm3, %v2376_v49, %v534_v46  ;;  %v919_v2 = vsel %vm472_vm3, %v903_v3, %v918_v8  ;;  %v916_v56 = vrot.slane %v903_v3, 4  ;;  %v679_v42 = vperm.slane %v671_v21, %v2249_v50  ;;  %v1161_v54 = vld [vmem:[%s2927_s3 + $0x8] sm:$0xff] }
 0x102   : > { %v1906_v62 = vpack.i.bf16 %v807_v15, %v919_v2  ;;  %v647_v14 = vsel %vm472_vm3, %v2399_v28, %v646_v0  ;;  %v805_v35 = vsel %vm472_vm3, %v804_v11, %v767_v59  ;;  %v543_v51 = vperm.slane %v535_v33, %v2249_v50 }
 0x103   : > { %v580_v31 = vrot.slane %v567_v43, 4  ;;  %v975_v29 = vsel %vm472_vm3, 0.0, %v974_v1  ;;  %v578_v18 = vrot.slane %v2474_v34, 4  ;;  %v917_v49 = vsel %vm472_vm3, %v916_v56, %v879_v10 }
 0x104   : > { %v655_v12 = vperm.slane %v647_v14, %v2249_v50  ;;  %v692_v17 = vrot.slane %v679_v42, 4  ;;  %v1901_v28 = vpack.i.bf16 %v805_v35, %v917_v49  ;;  %v690_v58 = vrot.slane %v2455_v44, 4 }
 0x105   : > { %1892 = vrot.lane.b32.xlu1 %v1891_v36, %s2004_s27  ;;  %v581_v7 = vsel %vm472_vm3, %v580_v31, %v543_v51  ;;  %v582_v19 = vrot.slane %v543_v51, 4  ;;  %v579_v26 = vsel %vm472_vm3, %v2462_v57, %v578_v18  ;;  %v2006_v45 = vmov 0  }
 0x106   : > { %v693_v34 = vsel %vm472_vm3, %v692_v17, %v655_v12  ;;  %v694_v30 = vrot.slane %v655_v12, 4  ;;  %v691_v24 = vsel %vm472_vm3, %v2383_v53, %v690_v58  ;;  %1922 = vset.pattern.permute.xlu0 %v2006_v45  ;;  %1921 = vset.pattern.permute.xlu2 %v2006_v45 }
 0x107   : > { %v1911_v9 = vpack.i.bf16 %v581_v7, %v693_v34  ;;  %v1896_v55 = vpack.i.bf16 %v579_v26, %v691_v24  ;;  %v583_v41 = vsel %vm472_vm3, %v567_v43, %v582_v19 }
 0x108   : > { %v695_v44 = vsel %vm472_vm3, %v679_v42, %v694_v30 }
 0x109   : > { %1907 = vrot.lane.b32.xlu0 %v1906_v62, %s2005_s7  ;;  %1109 = vrot.lane.b32.xlu2 %v975_v29, %s2005_s7  ;;  %v1916_v60 = vpack.i.bf16 %v583_v41, %v695_v44 }
 0x10d   : > { %1902 = vrot.lane.b32.xlu1 %v1901_v28, %s2000_s6 }
 0x111   : > { %1912 = vrot.lane.b32.xlu0 %v1911_v9, %s2000_s6  ;;  %1897 = vrot.lane.b32.xlu2 %v1896_v55, %s2004_s27 }
 0x115   : > { %1917 = vrot.lane.b32.xlu1 %v1916_v60, %s2005_s7 }
 0x119   : > { %1169 = vperm.xlu0 %1922, %v1161_v54   ;;  %1164 = vperm.xlu2 %1921, %v1160_v32  }
 0x124   : > { %v1090_v57 = vpop.permute.xlu2 %1089 }
 0x13a   : > { %v1010_v37 = vpop.permute.xlu0 %1009 }
 0x13e   : > { %v1050_v5 = vpop.permute.xlu1 %1049 }
 0x143   : > { %v2652_v4 = vpop.permute.xlu2 %1862 }
 0x144   : > { %v1865_v58 = vunpack.i.h.bf16 %v2652_v4  ;;  %v1864_v7 = vunpack.i.l.bf16 %v2652_v4 }
 0x14b   : > { %v990_v20 = vpop.permute.xlu2 %989 }
 0x14c   : > { %v1121_v63 = vsel %vm1116_vm4, %v2483_v48, %v990_v20 }
 0x14d   : > { %v1127_v21 = vsel %vm1122_vm5, %v1121_v63, %v1010_v37 }
 0x153   : > { %v1030_v27 = vpop.permute.xlu2 %1029 }
 0x154   : > { %v1133_v61 = vsel %vm1128_vm6, %v1127_v21, %v1030_v27 }
 0x155   : > { %v1139_v48 = vsel %vm1134_vm7, %v1133_v61, %v1050_v5 }
 0x15b   : > { %v1853_v53 = vpop.permute.xlu0 %1852  ;;  %v1883_v59 = vpop.permute.xlu2 %1882 }
 0x15c   : > { %v1854_v2 = vunpack.i.l.bf16 %v1853_v53  ;;  %v1885_v62 = vunpack.i.h.bf16 %v1883_v59  ;;  %v1884_v14 = vunpack.i.l.bf16 %v1883_v59  ;;  %v1855_v35 = vunpack.i.h.bf16 %v1853_v53 }
 0x15e   : > { %v1118_v28 = vsel %vm1116_vm4, %v2596_v52, %v1854_v2  ;;  %v1117_v19 = vsel %vm1116_vm4, %v2592_v16, %v1855_v35 }
 0x15f   : > { %v2654_v6 = vpop.permute.xlu1 %1867 }
 0x160   : > { %v1869_v20 = vunpack.i.l.bf16 %v2654_v6  ;;  %v1870_v63 = vunpack.i.h.bf16 %v2654_v6 }
 0x163   : > { %v2656_v23 = vpop.permute.xlu0 %1857  ;;  %v1110_v40 = vpop.permute.xlu2 %1109 }
 0x164   : > { %v1859_v51 = vunpack.i.l.bf16 %v2656_v23  ;;  %v1860_v29 = vunpack.i.h.bf16 %v2656_v23 }
 0x166   : > { %v1124_v26 = vsel %vm1122_vm5, %v1118_v28, %v1859_v51  ;;  %v1123_v44 = vsel %vm1122_vm5, %v1117_v19, %v1860_v29 }
 0x167   : > { %v1873_v39 = vpop.permute.xlu1 %1872  ;;  %v1130_v4 = vsel %vm1128_vm6, %v1124_v26, %v1864_v7 }
 0x168   : > { %v1875_v3 = vunpack.i.h.bf16 %v1873_v39  ;;  %v1874_v8 = vunpack.i.l.bf16 %v1873_v39  ;;  %v1129_v39 = vsel %vm1128_vm6, %v1123_v44, %v1865_v58  ;;  %v1136_v21 = vsel %vm1134_vm7, %v1130_v4, %v1869_v20 }
 0x16a   : > { %v1119_v1 = vsel %vm1116_vm4, %v2607_v47, %v1875_v3  ;;  %v1120_v33 = vsel %vm1116_vm4, %v2611_v38, %v1874_v8  ;;  %v1158_v8 = vld [vmem:[%s2926_s2] sm:$0xff] }
 0x16b   : > { %v1878_v10 = vpop.permute.xlu0 %1877  ;;  %v1898_v34 = vpop.permute.xlu2 %1897 }
 0x16c   : > { %v1880_v36 = vunpack.i.h.bf16 %v1878_v10  ;;  %v1879_v15 = vunpack.i.l.bf16 %v1878_v10  ;;  %v1899_v16 = vunpack.i.l.bf16 %v1898_v34  ;;  %v1900_v59 = vunpack.i.h.bf16 %v1898_v34 }
 0x16e   : > { %v1125_v56 = vsel %vm1122_vm5, %v1119_v1, %v1880_v36  ;;  %v1126_v42 = vsel %vm1122_vm5, %v1120_v33, %v1879_v15 }
 0x16f   : > { %v1888_v22 = vpop.permute.xlu1 %1887  ;;  %v1131_v47 = vsel %vm1128_vm6, %v1125_v56, %v1885_v62  ;;  %v1132_v12 = vsel %vm1128_vm6, %v1126_v42, %v1884_v14 }
 0x170   : > { %v1890_v18 = vunpack.i.h.bf16 %v1888_v22  ;;  %v1889_v49 = vunpack.i.l.bf16 %v1888_v22  ;;  %v1142_v22 = vsel %vm1140_vm9, %v1136_v21, %v1899_v16 }
 0x172   : > { %v1137_v24 = vsel %vm1134_vm7, %v1131_v47, %v1890_v18  ;;  %v1138_v9 = vsel %vm1134_vm7, %v1132_v12, %v1889_v49 }
 0x173   : > { %v1070_v46 = vpop.permute.xlu0 %1069  ;;  %v1165_v15 = vpop.permute.xlu2 %1164 }
 0x174   : > { %v1145_v25 = vsel %vm1140_vm9, %v1139_v48, %v1070_v46  ;;  %v1135_v48 = vsel %vm1134_vm7, %v1129_v39, %v1870_v63 }
 0x175   : > { %v1151_v0 = vsel %vm1146_vm8, %v1145_v25, %v1090_v57 }
 0x176   : > { %v1157_v11 = vsel %vm1152_vm10, %v1151_v0, %v1110_v40  ;;  %v1141_v40 = vsel %vm1140_vm9, %v1135_v48, %v1900_v59  ;;  %v1159_v0 = vld [vmem:[%s2926_s2 + $0x8] sm:$0xff] }
 0x177   : > { %v1893_v43 = vpop.permute.xlu1 %1892  ;;  %1703 = vmatpush.msk.msra.mxu0 %vm1179_vm11, %v1157_v11  ;;  %1711 = vmatpush.msk.msra.mxu1 %vm1179_vm11, %v1157_v11 }
 0x178   : > { %v1895_v38 = vunpack.i.h.bf16 %v1893_v43  ;;  %v1894_v17 = vunpack.i.l.bf16 %v1893_v43 }
 0x17a   : > { %v1144_v60 = vsel %vm1140_vm9, %v1138_v9, %v1894_v17  ;;  %v1143_v57 = vsel %vm1140_vm9, %v1137_v24, %v1895_v38 }
 0x17b   : > { %v1908_v31 = vpop.permute.xlu0 %1907 }
 0x17c   : > { %v1909_v52 = vunpack.i.l.bf16 %v1908_v31  ;;  %v1910_v53 = vunpack.i.h.bf16 %v1908_v31 }
 0x17f   : > { %v1903_v30 = vpop.permute.xlu1 %1902 }
 0x180   : > { %v1905_v55 = vunpack.i.h.bf16 %v1903_v30  ;;  %v1904_v41 = vunpack.i.l.bf16 %v1903_v30 }
 0x182   : > { %v1150_v37 = vsel %vm1146_vm8, %v1144_v60, %v1904_v41  ;;  %v1149_v5 = vsel %vm1146_vm8, %v1143_v57, %v1905_v55 }
 0x183   : > { %v1156_v27 = vsel %vm1152_vm10, %v1150_v37, %v1909_v52  ;;  %v1913_v23 = vpop.permute.xlu0 %1912  ;;  %v1155_v32 = vsel %vm1152_vm10, %v1149_v5, %v1910_v53 }
 0x184   : > { %1195 = vmatpush.msra.mxu0 %v1156_v27  ;;  %1712 = vmatpush.msra.mxu1 %v1156_v27  ;;  %v1914_v10 = vunpack.i.l.bf16 %v1913_v23  ;;  %v1915_v54 = vunpack.i.h.bf16 %v1913_v23 }
 0x186   : > { %1196 = vmatpush.msra.mxu0 %v1155_v32  ;;  %1713 = vmatpush.msra.mxu1 %v1155_v32  ;;  %v1148_v61 = vsel %vm1146_vm8, %v1142_v22, %v1914_v10  ;;  %v1147_v6 = vsel %vm1146_vm8, %v1141_v40, %v1915_v54 }
 0x187   : > { %v1918_v45 = vpop.permute.xlu1 %1917 }
 0x188   : > { %v1920_v46 = vunpack.i.h.bf16 %v1918_v45  ;;  %v1919_v25 = vunpack.i.l.bf16 %v1918_v45 }
 0x18a   : > { %v1154_v3 = vsel %vm1152_vm10, %v1148_v61, %v1919_v25  ;;  %v1153_v36 = vsel %vm1152_vm10, %v1147_v6, %v1920_v46 }
 0x18b   : > { %1197 = vmatpush.msra.mxu0 %v1154_v3  ;;  %1714 = vmatpush.msra.mxu1 %v1154_v3  ;;  %v1170_v11 = vpop.permute.xlu0 %1169 }
 0x18d   : > { %1198 = vmatpush.msra.mxu0 %v1153_v36  ;;  %1715 = vmatpush.msra.mxu1 %v1153_v36 }
 0x18e   : > { %1704 = vmatmul.msk.f32.vlgmr.msra.gmra.mxu0 %vm1172_vm12, %v1158_v8  ;;  %1705 = vmatmul.msk.f32.vlgmr.msra.gmra.mxu1 %vm1172_vm12, %v1159_v0 }
 0x20b   : > { %v1200_v43 = vpop.f32.mrf.mxu0  ;;  %v1203_v1 = vpop.f32.mrf.mxu1 }
 0x20c   : > { %v1201_v33 = vadd.f32 %v1200_v43, %v1165_v15  ;;  %v1204_v2 = vadd.f32 %v1203_v1, %v1170_v11 }
 0x20e   : > { %1210 = vrot.lane.b32.xlu2 %v1204_v2, %s2005_s7  ;;  %1220 = vrot.lane.b32.xlu0 %v1201_v33, %s2004_s27  ;;  %v1252_v18 = vrot.slane %v1201_v33, 4  ;;  %v1364_v34 = vrot.slane %v1204_v2, 4 }
 0x20f   : > { %1208 = vrot.lane.b32.xlu1 %v1201_v33, %s2005_s7 }
 0x216   : > { %1216 = vrot.lane.b32.xlu2 %v1204_v2, %s2000_s6  ;;  %1228 = vrot.lane.b32.xlu0 %v1204_v2, %s2001_s8 }
 0x217   : > { %1214 = vrot.lane.b32.xlu1 %v1201_v33, %s2000_s6 }
 0x21e   : > { %1226 = vrot.lane.b32.xlu2 %v1201_v33, %s2001_s8  ;;  %1238 = vrot.lane.b32.xlu0 %v1201_v33, %s1999_s30 }
 0x21f   : > { %1222 = vrot.lane.b32.xlu1 %v1204_v2, %s2004_s27 }
 0x226   : > { %1234 = vrot.lane.b32.xlu2 %v1204_v2, %s2003_s9  ;;  %1246 = vrot.lane.b32.xlu0 %v1204_v2, %s2002_s29 }
 0x227   : > { %1232 = vrot.lane.b32.xlu1 %v1201_v33, %s2003_s9 }
 0x22e   : > { %1244 = vrot.lane.b32.xlu2 %v1201_v33, %s2002_s29 }
 0x22f   : > { %1240 = vrot.lane.b32.xlu1 %v1204_v2, %s1999_s30  ;;  %s1702_s30 = sshll.u32 %s296_s11, 7  ;;  %s1707_s11 = sshll.u32 (%p2115_p10), %s1981_s20, 5 }
 0x230   : > { %s2805_s17 = scalar_lea.vmem [#allocation5], %s1702_s30  ;;  %s1498_s6 = sadd.s32 (%p2115_p10), %s1977_s19, %s1707_s11 }
 0x231   : > { %s1708_s8 = sshll.u32 (%p2115_p10), %s1498_s6, 3 }
 0x232   : > { %s1500_s12 = scalar_lea.vmem (%p2115_p10), %s2928_s4, %s1708_s8 }
 0x268   : > { %v1211_v56 = vpop.permute.xlu2 %1210 }
 0x269   : > { %v1376_v60 = vrot.slane %v1211_v56, 4 }
 0x270   : > { %v1217_v42 = vpop.permute.xlu2 %1216 }
 0x271   : > { %v1362_v26 = vrot.slane %v1217_v42, 4  ;;  %v1365_v9 = vsel %vm472_vm3, %v1217_v42, %v1364_v34 }
 0x272   : > { %v1373_v5 = vperm.slane %v1365_v9, %v2210_v13 }
 0x273   : > { %v1363_v57 = vsel %vm472_vm3, %v1362_v26, %v1204_v2 }
 0x274   : > { %v1369_v10 = vperm.slane %v1363_v57, %v2210_v13  ;;  %v1424_v40 = vrot.slane %v1373_v5, 4 }
 0x276   : > { %v1412_v0 = vrot.slane %v1369_v10, 4 }
 0x278   : > { %v1227_v14 = vpop.permute.xlu2 %1226 }
 0x279   : > { %v1276_v20 = vrot.slane %v1227_v14, 4 }
 0x280   : > { %v1221_v62 = vpop.permute.xlu0 %1220  ;;  %v2735_v28 = vpop.permute.xlu2 %1234 }
 0x281   : > { %v1209_v35 = vpop.permute.xlu1 %1208  ;;  %v1262_v31 = vrot.slane %v1221_v62, 4  ;;  %v1400_v1 = vrot.slane %v2735_v28, 4 }
 0x282   : > { %v1264_v51 = vrot.slane %v1209_v35, 4 }
 0x283   : > { %v1263_v12 = vsel %vm472_vm3, %v1262_v31, %v1209_v35 }
 0x284   : > { %v1265_v49 = vsel %vm472_vm3, %v1221_v62, %v1264_v51  ;;  %v1269_v30 = vperm.slane %v1263_v12, %v2210_v13 }
 0x285   : > { %v1273_v7 = vperm.slane %v1265_v49, %v2210_v13 }
 0x286   : > { %v1298_v4 = vrot.slane %v1269_v30, 4 }
 0x287   : > { %v1310_v41 = vrot.slane %v1273_v7, 4 }
 0x288   : > { %v2730_v29 = vpop.permute.xlu0 %1228  ;;  %v1245_v21 = vpop.permute.xlu2 %1244 }
 0x289   : > { %v1215_v47 = vpop.permute.xlu1 %1214  ;;  %v1286_v36 = vrot.slane %v1245_v21, 4 }
 0x28a   : > { %v1250_v38 = vrot.slane %v1215_v47, 4  ;;  %v1253_v17 = vsel %vm472_vm3, %v1215_v47, %v1252_v18 }
 0x28b   : > { %v1261_v58 = vperm.slane %v1253_v17, %v2210_v13 }
 0x28c   : > { %v1251_v19 = vsel %vm472_vm3, %v1250_v38, %v1201_v33  ;;  %v1388_v33 = vrot.slane %v2730_v29, 4 }
 0x28d   : > { %v1257_v24 = vperm.slane %v1251_v19, %v2210_v13  ;;  %v1312_v55 = vrot.slane %v1261_v58, 4  ;;  %v1311_v53 = vsel %vm472_vm3, %v1310_v41, %v1261_v58 }
 0x28e   : > { %v2754_v22 = vperm.slane %v1311_v53, %v2249_v50 }
 0x28f   : > { %v1300_v44 = vrot.slane %v1257_v24, 4  ;;  %v1299_v27 = vsel %vm472_vm3, %v1298_v4, %v1257_v24  ;;  %v1313_v23 = vsel %vm472_vm3, %v1273_v7, %v1312_v55 }
 0x290   : > { %v1239_v52 = vpop.permute.xlu0 %1238  ;;  %v2759_v48 = vperm.slane %v1299_v27, %v2249_v50  ;;  %v2762_v46 = vperm.slane %v1313_v23, %v2249_v50  ;;  %v1356_v2 = vrot.slane %v2754_v22, 4 }
 0x291   : > { %v1274_v16 = vrot.slane %v1239_v52, 4  ;;  %v1223_v37 = vpop.permute.xlu1 %1222  ;;  %v1301_v63 = vsel %vm472_vm3, %v1269_v30, %v1300_v44  ;;  %v1277_v54 = vsel %vm472_vm3, %v1239_v52, %v1276_v20 }
 0x292   : > { %v1374_v39 = vrot.slane %v1223_v37, 4  ;;  %v1377_v59 = vsel %vm472_vm3, %v1223_v37, %v1376_v60  ;;  %v1309_v6 = vperm.slane %v1301_v63, %v2249_v50  ;;  %v1285_v3 = vperm.slane %v1277_v54, %v2210_v13 }
 0x293   : > { %v1385_v32 = vperm.slane %v1377_v59, %v2210_v13  ;;  %v1275_v45 = vsel %vm472_vm3, %v1274_v16, %v1227_v14  ;;  %v1348_v62 = vrot.slane %v2759_v48, 4  ;;  %v1360_v14 = vrot.slane %v2762_v46, 4 }
 0x294   : > { %v1375_v61 = vsel %vm472_vm3, %v1374_v39, %v1211_v56  ;;  %v1281_v15 = vperm.slane %v1275_v45, %v2210_v13  ;;  %v1352_v31 = vrot.slane %v1309_v6, 4  ;;  %v1336_v18 = vrot.slane %v1285_v3, 4 }
 0x295   : > { %v1381_v25 = vperm.slane %v1375_v61, %v2210_v13  ;;  %v1422_v8 = vrot.slane %v1385_v32, 4  ;;  %v1425_v7 = vsel %vm472_vm3, %v1385_v32, %v1424_v40 }
 0x296   : > { %v1324_v12 = vrot.slane %v1281_v15, 4 }
 0x297   : > { %v1410_v11 = vrot.slane %v1381_v25, 4  ;;  %v1413_v49 = vsel %vm472_vm3, %v1381_v25, %v1412_v0  ;;  %v1423_v47 = vsel %vm472_vm3, %v1422_v8, %v1373_v5 }
 0x298   : > { %v1247_v43 = vpop.permute.xlu0 %1246  ;;  %v2787_v30 = vperm.slane %v1413_v49, %v2249_v50  ;;  %v2790_v24 = vperm.slane %v1423_v47, %v2249_v50 }
 0x299   : > { %v1398_v56 = vrot.slane %v1247_v43, 4  ;;  %v1233_v42 = vpop.permute.xlu1 %1232  ;;  %v1411_v38 = vsel %vm472_vm3, %v1410_v11, %v1369_v10  ;;  %v1401_v26 = vsel %vm472_vm3, %v1247_v43, %v1400_v1  ;;  %v1433_v1 = vperm.slane %v1425_v7, %v2249_v50 }
 0x29a   : > { %v1287_v35 = vsel %vm472_vm3, %v1286_v36, %v1233_v42  ;;  %v1288_v51 = vrot.slane %v1233_v42, 4  ;;  %v1417_v41 = vperm.slane %v1411_v38, %v2249_v50  ;;  %v1409_v57 = vperm.slane %v1401_v26, %v2210_v13 }
 0x29b   : > { %v1293_v58 = vperm.slane %v1287_v35, %v2210_v13  ;;  %v1399_v19 = vsel %vm472_vm3, %v1398_v56, %v2735_v28 }
 0x29c   : > { %v1289_v17 = vsel %vm472_vm3, %v1245_v21, %v1288_v51  ;;  %v1405_v60 = vperm.slane %v1399_v19, %v2210_v13  ;;  %v1446_v61 = vrot.slane %v1409_v57, 4 }
 0x29d   : > { %v1297_v34 = vperm.slane %v1289_v17, %v2210_v13  ;;  %v1322_v9 = vrot.slane %v1293_v58, 4  ;;  %v1325_v55 = vsel %vm472_vm3, %v1293_v58, %v1324_v12 }
 0x29e   : > { %v1333_v44 = vperm.slane %v1325_v55, %v2249_v50  ;;  %v1434_v45 = vrot.slane %v1405_v60, 4 }
 0x29f   : > { %v1334_v52 = vrot.slane %v1297_v34, 4  ;;  %v1337_v28 = vsel %vm472_vm3, %v1297_v34, %v1336_v18  ;;  %v1323_v4 = vsel %vm472_vm3, %v1322_v9, %v1281_v15 }
 0x2a0   : > { %v1345_v16 = vperm.slane %v1337_v28, %v2249_v50  ;;  %v1329_v37 = vperm.slane %v1323_v4, %v2249_v50  ;;  %v1350_v20 = vrot.slane %v1333_v44, 4  ;;  %v1353_v53 = vsel %vm472_vm3, %v1333_v44, %v1352_v31 }
 0x2a1   : > { %v1335_v5 = vsel %vm472_vm3, %v1334_v52, %v1285_v3  ;;  %v1241_v27 = vpop.permute.xlu1 %1240  ;;  %1477 = vst.msk [vmem:[%s2805_s17 + $0x18] sm:$0xff] %vm1116_vm4, %v1353_v53 }
 0x2a2   : > { %v1341_v23 = vperm.slane %v1335_v5, %v2249_v50  ;;  %v1358_v39 = vrot.slane %v1345_v16, 4  ;;  %v1361_v59 = vsel %vm472_vm3, %v1345_v16, %v1360_v14  ;;  %v1386_v10 = vrot.slane %v1241_v27, 4 }
 0x2a3   : > { %v1346_v63 = vrot.slane %v1329_v37, 4  ;;  %v1349_v54 = vsel %vm472_vm3, %v1329_v37, %v1348_v62  ;;  %v1351_v32 = vsel %vm472_vm3, %v1350_v20, %v1309_v6  ;;  %1481 = vst.msk [vmem:[%s2805_s17 + $0x38] sm:$0xff] %vm1116_vm4, %v1361_v59  ;;  %v1389_v21 = vsel %vm472_vm3, %v1241_v27, %v1388_v33 }
 0x2a4   : > { %v1354_v25 = vrot.slane %v1341_v23, 4  ;;  %1475 = vst.msk [vmem:[%s2805_s17 + $0x8] sm:$0xff] %vm1116_vm4, %v1349_v54  ;;  %v1387_v40 = vsel %vm472_vm3, %v1386_v10, %v2730_v29  ;;  %v1357_v8 = vsel %vm472_vm3, %v1341_v23, %v1356_v2  ;;  %v1397_v0 = vperm.slane %v1389_v21, %v2210_v13 }
 0x2a5   : > { %v1347_v3 = vsel %vm472_vm3, %v1346_v63, %v2759_v48  ;;  %1476 = vst.msk [vmem:[%s2805_s17 + $0x10] sm:$0xff] %vm1116_vm4, %v1351_v32  ;;  %v1393_v6 = vperm.slane %v1387_v40, %v2210_v13  ;;  %v1359_v15 = vsel %vm472_vm3, %v1358_v39, %v2762_v46  ;;  %v1460_v13 = vrot.slane %v1417_v41, 4 }
 0x2a6   : > { %v1355_v36 = vsel %vm472_vm3, %v1354_v25, %v2754_v22  ;;  %1474 = vst.msk [vmem:[%s2805_s17] sm:$0xff] %vm1116_vm4, %v1347_v3  ;;  %v1447_v11 = vsel %vm472_vm3, %v1446_v61, %v1397_v0  ;;  %v1448_v43 = vrot.slane %v1397_v0, 4  ;;  %v1464_v33 = vrot.slane %v2787_v30, 4 }
 0x2a7   : > { %1478 = vst.msk [vmem:[%s2805_s17 + $0x20] sm:$0xff] %vm1116_vm4, %v1355_v36  ;;  %v1435_v29 = vsel %vm472_vm3, %v1434_v45, %v1393_v6  ;;  %v1436_v48 = vrot.slane %v1393_v6, 4  ;;  %v1453_v46 = vperm.slane %v1447_v11, %v2249_v50  ;;  %v1468_v2 = vrot.slane %v2790_v24, 4 }
 0x2a8   : > { %1479 = vst.msk [vmem:[%s2805_s17 + $0x28] sm:$0xff] %vm1116_vm4, %v1357_v8  ;;  %v1441_v22 = vperm.slane %v1435_v29, %v2249_v50  ;;  %v1449_v42 = vsel %vm472_vm3, %v1409_v57, %v1448_v43 }
 0x2a9   : > { %1480 = vst.msk [vmem:[%s2805_s17 + $0x30] sm:$0xff] %vm1116_vm4, %v1359_v15  ;;  %v1437_v56 = vsel %vm472_vm3, %v1405_v60, %v1436_v48  ;;  %v1457_v14 = vperm.slane %v1449_v42, %v2249_v50  ;;  %v1466_v31 = vrot.slane %v1453_v46, 4  ;;  %v1469_v18 = vsel %vm472_vm3, %v1453_v46, %v1468_v2 }
 0x2aa   : > { %v1445_v62 = vperm.slane %v1437_v56, %v2249_v50  ;;  %v1458_v35 = vrot.slane %v1441_v22, 4  ;;  %v1461_v51 = vsel %vm472_vm3, %v1441_v22, %v1460_v13  ;;  %1487 = vst.msk [vmem:[%s2805_s17 + $0x68] sm:$0xff] %vm1116_vm4, %v1469_v18  ;;  %v1472_v50 = vrot.slane %v1433_v1, 4  ;;  %v1573_v44 = vld [vmem:[%s2805_s17 + $0x38] sm:$0xff] (%p2115_p10) }
 0x2ab   : > { %1483 = vst.msk [vmem:[%s2805_s17 + $0x48] sm:$0xff] %vm1116_vm4, %v1461_v51  ;;  %v1470_v38 = vrot.slane %v1457_v14, 4  ;;  %v1467_v17 = vsel %vm472_vm3, %v1466_v31, %v2790_v24  ;;  %v1561_v34 = vld [vmem:[%s2805_s17 + $0x8] sm:$0xff] (%p2115_p10)  ;;  %v1565_v24 = vld [vmem:[%s2805_s17 + $0x18] sm:$0xff] (%p2115_p10) }
 0x2ac   : > { %v1459_v49 = vsel %vm472_vm3, %v1458_v35, %v1417_v41  ;;  %v1462_v47 = vrot.slane %v1445_v62, 4  ;;  %v1465_v12 = vsel %vm472_vm3, %v1445_v62, %v1464_v33  ;;  %v1473_v19 = vsel %vm472_vm3, %v1457_v14, %v1472_v50  ;;  %1486 = vst.msk [vmem:[%s2805_s17 + $0x60] sm:$0xff] %vm1116_vm4, %v1467_v17 }
 0x2ad   : > { %1482 = vst.msk [vmem:[%s2805_s17 + $0x40] sm:$0xff] %vm1116_vm4, %v1459_v49  ;;  %v1471_v7 = vsel %vm472_vm3, %v1470_v38, %v1433_v1  ;;  %1496 = sbr.rel (!%p2115_p10) target bundleno = 706 (0x2c2), region = 116  ;;  %v1559_v26 = vld [vmem:[%s2805_s17] sm:$0xff] (%p2115_p10) }
 0x2ae   : > { %v1463_v58 = vsel %vm472_vm3, %v1462_v47, %v2787_v30  ;;  %1485 = vst.msk [vmem:[%s2805_s17 + $0x58] sm:$0xff] %vm1116_vm4, %v1465_v12  ;;  %v1563_v30 = vld [vmem:[%s2805_s17 + $0x10] sm:$0xff] (%p2115_p10)  ;;  %v1567_v9 = vld [vmem:[%s2805_s17 + $0x20] sm:$0xff] (%p2115_p10) }
 0x2af   : > { %1484 = vst.msk [vmem:[%s2805_s17 + $0x50] sm:$0xff] %vm1116_vm4, %v1463_v58  ;;  %v1569_v55 = vld [vmem:[%s2805_s17 + $0x28] sm:$0xff] (%p2115_p10) }
 0x2b0   : > { %1488 = vst.msk [vmem:[%s2805_s17 + $0x70] sm:$0xff] %vm1116_vm4, %v1471_v7  ;;  %v1571_v41 = vld [vmem:[%s2805_s17 + $0x30] sm:$0xff] (%p2115_p10) }
 0x2b1   : > { %1489 = vst.msk [vmem:[%s2805_s17 + $0x78] sm:$0xff] %vm1116_vm4, %v1473_v19  ;;  %v1585_v16 = vld [vmem:[%s2805_s17 + $0x68] sm:$0xff] (%p2115_p10) }
 0x2b2   : > { %1560 = vst [vmem:[%s1500_s12] sm:$0xff] %v1559_v26  ;;  %v1577_v28 = vld [vmem:[%s2805_s17 + $0x48] sm:$0xff] }
 0x2b3   : > { %1562 = vst [vmem:[%s1500_s12 + $0x10] sm:$0xff] %v1561_v34  ;;  %v1583_v4 = vld [vmem:[%s2805_s17 + $0x60] sm:$0xff] }
 0x2b4   : > { %1564 = vst [vmem:[%s1500_s12 + $0x20] sm:$0xff] %v1563_v30  ;;  %v1575_v52 = vld [vmem:[%s2805_s17 + $0x40] sm:$0xff] }
 0x2b5   : > { %1566 = vst [vmem:[%s1500_s12 + $0x30] sm:$0xff] %v1565_v24  ;;  %v1581_v57 = vld [vmem:[%s2805_s17 + $0x58] sm:$0xff] }
 0x2b6   : > { %1568 = vst [vmem:[%s1500_s12 + $0x40] sm:$0xff] %v1567_v9  ;;  %v1579_v60 = vld [vmem:[%s2805_s17 + $0x50] sm:$0xff] }
 0x2b7   : > { %1570 = vst [vmem:[%s1500_s12 + $0x50] sm:$0xff] %v1569_v55  ;;  %v1587_v37 = vld [vmem:[%s2805_s17 + $0x70] sm:$0xff] }
 0x2b8   : > { %1572 = vst [vmem:[%s1500_s12 + $0x60] sm:$0xff] %v1571_v41  ;;  %v1589_v5 = vld [vmem:[%s2805_s17 + $0x78] sm:$0xff] }
 0x2b9   : > { %1574 = vst [vmem:[%s1500_s12 + $0x70] sm:$0xff] %v1573_v44 }
 0x2ba   : > { %1576 = vst [vmem:[%s1500_s12 + $0x80] sm:$0xff] %v1575_v52 }
 0x2bb   : > { %1578 = vst [vmem:[%s1500_s12 + $0x90] sm:$0xff] %v1577_v28 }
 0x2bc   : > { %1580 = vst [vmem:[%s1500_s12 + $0xa0] sm:$0xff] %v1579_v60 }
 0x2bd   : > { %1582 = vst [vmem:[%s1500_s12 + $0xb0] sm:$0xff] %v1581_v57 }
 0x2be   : > { %1584 = vst [vmem:[%s1500_s12 + $0xc0] sm:$0xff] %v1583_v4 }
 0x2bf   : > { %1586 = vst [vmem:[%s1500_s12 + $0xd0] sm:$0xff] %v1585_v16 }
 0x2c0   : > { %1588 = vst [vmem:[%s1500_s12 + $0xe0] sm:$0xff] %v1587_v37 }
 0x2c1   : > { %1590 = vst [vmem:[%s1500_s12 + $0xf0] sm:$0xff] %v1589_v5 }
 0x2c2 PF: > { %s14_s23 = sadd.s32 1, %s1993_s23   ;;  %s2937_s15 = smov %s1965_s16 }
 0x2c3   : > { %p11_p1 = scmp.ge.s32.totalorder %s14_s23, 6   ;;  %s2938_s16 = smov %s2123_s14 }
 0x2c4   : > { %s2939_s17 = smov %s1973_s18  ;;  %s2940_s18 = smov %s2120_s13 }
 0x2c5   : > { %s2941_s19 = smov %s1985_s21  ;;  %s2942_s20 = smov %s1989_s22 }
 0x2c6   : > { %s2943_s21 = smov %s2083_s28  ;;  %s2944_s22 = smov %s2948_s26 }
 0x2c7   :  { %13 = sbr.rel (!%p11_p1) target bundleno = 5 (0x5), region = 193 }

</bundles_post_ra>
